<compile_context>
chip_gen: v6e
topology: v6e:2x2x1
jax: 0.10.0
libtpu: 0.0.40
codegen_flags: <defaults>
</compile_context>

<pallas_src>
import functools

import jax
import jax.numpy as jnp
from jax.experimental import pallas as pl
from jax.experimental.pallas import tpu as pltpu

F32 = jnp.float32
LANE = 128
GATHER_DTYPE = jnp.float32   # jnp.bfloat16 on v6e/v7x for the big gather/scatter dots

VMEM_SPEC = pl.BlockSpec(memory_space=pltpu.MemorySpace.VMEM)


def _round_up(x, m):
    return (x + m - 1) // m * m


# --------------------------------------------------------------------------------------
# Host-side weight packing: many tiny 2-D arrays -> one (rows, 128) lane-dense f32 slab
# with 8-aligned (sublane-aligned) row offsets, sliced with static offsets in-kernel.
# --------------------------------------------------------------------------------------
class SlabPacker:
    def __init__(self):
        self._chunks = []
        self.offsets = {}          # name -> (row_offset, rows, cols)
        self._cursor = 0

    def add(self, name, arr):
        arr = jnp.asarray(arr, F32)
        r, c = arr.shape
        assert c <= LANE, (name, arr.shape)
        pr = _round_up(r, 8)
        chunk = jnp.zeros((pr, LANE), F32).at[:r, :c].set(arr)
        self.offsets[name] = (self._cursor, r, c)
        self._chunks.append(chunk)
        self._cursor += pr

    def finalize(self):
        return jnp.concatenate(self._chunks, axis=0)


def _slab_read(ref, entry, cols=None):
    off, r, c = entry
    v = ref[pl.ds(off, r), :]
    c = c if cols is None else cols
    return v if c == LANE else v[:, :c]


def _gdot(a, b):
    """Gather/scatter/segment-sum dot; cast site for GATHER_DTYPE, f32 accumulate."""
    return jnp.dot(a.astype(GATHER_DTYPE), b.astype(GATHER_DTYPE),
                   preferred_element_type=F32)


# --------------------------------------------------------------------------------------
# One GATv2 relation (dense incidence formulation), traced inside the fused kernel.
#   x_src: (Ns, Fs)  x_dst: (Nd, Fd)  ea: (E, edge_dim)
#   S: (E, Ns) one-hot sources, D: (E, Nd) one-hot targets, DT: (Nd, E) == D.T
# --------------------------------------------------------------------------------------
def _gat_relation(x_src, x_dst, ea, S, D, DT, slab_ref, offs, *, heads, out_ch, concat):
    g = lambda name: _slab_read(slab_ref, offs[name])

    # lin_l / lin_r carry a bias, lin_edge does not (PyG GATv2Conv defaults).
    xl = jnp.dot(x_src, g('wl'), preferred_element_type=F32) + g('bl')   # (Ns, H*C)
    xr = jnp.dot(x_dst, g('wr'), preferred_element_type=F32) + g('br')   # (Nd, H*C)
    ee = jnp.dot(ea, g('we'), preferred_element_type=F32)                # (E,  H*C)

    xl_e = _gdot(S, xl)                                                  # (E, H*C) src feats
    xr_e = _gdot(D, xr)                                                  # (E, H*C) dst feats

    x = xl_e + xr_e + ee
    x = jnp.where(x > 0, x, 0.2 * x)                                     # LeakyReLU(0.2)

    # (E, heads) attention scores in one tiny MXU dot (block-diagonal att matrix).
    s_heads = jnp.dot(x, g('att_blk'), preferred_element_type=F32)

    # Per-target softmax over incoming edges; stabilised with the global per-head max
    # (identical result: the max cancels in the ratio), so no (E,N) masked temporaries.
    gmax = jnp.max(s_heads, axis=0, keepdims=True)                       # (1, heads)
    ex = jnp.exp(s_heads - gmax)                                         # (E, heads)
    tsum = _gdot(DT, ex)                                                 # (Nd, heads) seg-sum
    edenom = _gdot(D, tsum)                                              # (E, heads) gather back
    alpha = ex / jnp.maximum(edenom, 1e-20)                              # guard empty targets

    # GATv2 message = alpha_h * lin_l(x_src)[src]_h; per-head broadcast via static lane
    # slices (no 'expand' dot); concat=False folds the head mean before the scatter.
    per_head = [xl_e[:, h * out_ch:(h + 1) * out_ch] * alpha[:, h:h + 1]
                for h in range(heads)]
    if concat:
        msg = jnp.concatenate(per_head, axis=1)                          # (E, H*C)
    else:
        msg = sum(per_head) * (1.0 / heads)                              # (E, C)

    out = _gdot(DT, msg)                                                 # scatter-add (Nd, .)
    out = out + g('bias')                                                # post-aggregation bias
    return jnp.maximum(out, 0.0)                                         # F.relu after HeteroConv


# --------------------------------------------------------------------------------------
# AttentionEdgeClassifier: project at node level, gather to edges, lane-dense output.
# --------------------------------------------------------------------------------------
def _edge_classifier(x_pitcher, x_batter, ea, S, D, slab_ref, offs):
    c = lambda name: _slab_read(slab_ref, offs[name])

    q = _gdot(S, jnp.dot(x_pitcher, c('wq'), preferred_element_type=F32) + c('bq'))
    k = _gdot(D, jnp.dot(x_batter, c('wk'), preferred_element_type=F32) + c('bk'))
    e = jnp.dot(ea, c('we'), preferred_element_type=F32) + c('be')

    score = jnp.sum(q * k, axis=-1, keepdims=True)                       # (E, 1)
    w = 1.0 / (1.0 + jnp.exp(-score))                                    # exact sigmoid
    combined = w * k + (1.0 - w) * q + e

    h = jnp.dot(combined, c('w1'), preferred_element_type=F32) + c('b1')
    h = jnp.maximum(h, 0.0)

    # Output head read at full padded 128-lane width -> unmasked lane-dense store.
    w2p = _slab_read(slab_ref, offs['w2'], cols=LANE)                    # (hidden, 128)
    b2p = _slab_read(slab_ref, offs['b2'], cols=LANE)                    # (1, 128)
    return jnp.dot(h, w2p, preferred_element_type=F32) + b2p             # (E, 128)


# --------------------------------------------------------------------------------------
# Fused forward kernel: gat1(faces, rev) -> relu -> gat2(faces, rev) -> relu -> classifier.
# --------------------------------------------------------------------------------------
def fused_forward_kernel(xp_ref, xb_ref, ea_ref, idxc_ref, idxr_ref,
                         slab_ref, logits_ref, *, cfg):
    E = ea_ref.shape[0]
    n_p = xp_ref.shape[0]
    n_b = xb_ref.shape[0]
    heads = cfg['heads']
    hidden = cfg['hidden']
    offs = cfg['offs']

    idx_c = idxc_ref[...]                                   # (E, 2) int32 [src_p, dst_b]
    idx_r = idxr_ref[...]                                   # (2, E) int32 (row-major copy)

    # Incidence masks built once and shared by both relations (rev edges are the literal
    # reverse of forward edges, so S_rev == D_f and D_rev == S_f).  Transposed variants
    # come from a (N, E) iota compare instead of an in-dot XLU transpose.
    iota_ep = jax.lax.broadcasted_iota(jnp.int32, (E, n_p), 1)
    iota_eb = jax.lax.broadcasted_iota(jnp.int32, (E, n_b), 1)
    iota_pe = jax.lax.broadcasted_iota(jnp.int32, (n_p, E), 0)
    iota_be = jax.lax.broadcasted_iota(jnp.int32, (n_b, E), 0)

    S_f = (iota_ep == idx_c[:, 0:1]).astype(F32)            # (E, Np) pitcher sources
    D_f = (iota_eb == idx_c[:, 1:2]).astype(F32)            # (E, Nb) batter targets
    ST_f = (iota_pe == idx_r[0:1, :]).astype(F32)           # (Np, E) == S_f.T
    DT_f = (iota_be == idx_r[1:2, :]).astype(F32)           # (Nb, E) == D_f.T

    x_p = xp_ref[...]
    x_b = xb_ref[...]
    ea = ea_ref[...]

    # gat1 (heads=2, concat=True) + ReLU.  HeteroConv aggr='sum' is trivial here: exactly
    # one relation writes each node type.
    b1 = _gat_relation(x_p, x_b, ea, S_f, D_f, DT_f, slab_ref, offs['g1f'],
                       heads=heads, out_ch=hidden, concat=True)
    p1 = _gat_relation(x_b, x_p, ea, D_f, S_f, ST_f, slab_ref, offs['g1r'],
                       heads=heads, out_ch=hidden, concat=True)

    # gat2 (heads=2, concat=False -> head mean) + ReLU.
    b2 = _gat_relation(p1, b1, ea, S_f, D_f, DT_f, slab_ref, offs['g2f'],
                       heads=heads, out_ch=hidden, concat=False)
    p2 = _gat_relation(b1, p1, ea, D_f, S_f, ST_f, slab_ref, offs['g2r'],
                       heads=heads, out_ch=hidden, concat=False)

    # AttentionEdgeClassifier over ('pitcher','faces','batter') edges.
    logits_ref[...] = _edge_classifier(p2, b2, ea, S_f, D_f, slab_ref, offs['cls'])


# --------------------------------------------------------------------------------------
# Parameter init (shapes match the PyTorch module) + single-slab packing.
# --------------------------------------------------------------------------------------
def _init_linear(key, in_dim, out_dim, bias=True, scale=0.1):
    kw, kb = jax.random.split(key)
    w = scale * jax.random.normal(kw, (in_dim, out_dim), F32)
    b = scale * jax.random.normal(kb, (1, out_dim), F32) if bias else None
    return w, b


def _gat_relation_params(key, in_src, in_dst, out_ch, heads, edge_dim, concat):
    ks = jax.random.split(key, 5)
    wl, bl = _init_linear(ks[0], in_src, heads * out_ch)
    wr, br = _init_linear(ks[1], in_dst, heads * out_ch)
    we, _ = _init_linear(ks[2], edge_dim, heads * out_ch, bias=False)
    att = 0.1 * jax.random.normal(ks[3], (1, heads * out_ch), F32)
    bias_dim = heads * out_ch if concat else out_ch
    bias = 0.1 * jax.random.normal(ks[4], (1, bias_dim), F32)

    hc = heads * out_ch
    att_blk = jnp.zeros((hc, heads), F32)      # block-diag att -> (E, heads) in one dot
    for h in range(heads):
        att_blk = att_blk.at[h * out_ch:(h + 1) * out_ch, h].set(
            att[0, h * out_ch:(h + 1) * out_ch])

    return dict(wl=wl, bl=bl, wr=wr, br=br, we=we, att_blk=att_blk, bias=bias)


def build_params(key, metadata, hidden, heads, edge_dim, num_classes):
    ks = jax.random.split(key, 9)
    hc = heads * hidden

    packer = SlabPacker()
    offs = {}

    rels = {
        'g1f': _gat_relation_params(ks[0], metadata['pitcher'], metadata['batter'],
                                    hidden, heads, edge_dim, concat=True),
        'g1r': _gat_relation_params(ks[1], metadata['batter'], metadata['pitcher'],
                                    hidden, heads, edge_dim, concat=True),
        'g2f': _gat_relation_params(ks[2], hc, hc, hidden, heads, edge_dim, concat=False),
        'g2r': _gat_relation_params(ks[3], hc, hc, hidden, heads, edge_dim, concat=False),
    }
    for rel, p in rels.items():
        for name, arr in p.items():
            packer.add(f'{rel}/{name}', arr)
        offs[rel] = {name: packer.offsets[f'{rel}/{name}'] for name in p}

    wq, bq = _init_linear(ks[4], hidden, hidden)
    wk, bk = _init_linear(ks[5], hidden, hidden)
    we, be = _init_linear(ks[6], edge_dim, hidden)
    w1, b1 = _init_linear(ks[7], hidden, hidden)
    w2, b2 = _init_linear(ks[8], hidden, num_classes)
    cls = {'wq': wq, 'bq': bq, 'wk': wk, 'bk': bk, 'we': we, 'be': be,
           'w1': w1, 'b1': b1, 'w2': w2, 'b2': b2}
    for name, arr in cls.items():
        packer.add(f'cls/{name}', arr)
    offs['cls'] = {name: packer.offsets[f'cls/{name}'] for name in cls}

    slab = packer.finalize()
    cfg = dict(heads=heads, hidden=hidden, num_classes=num_classes, offs=offs)
    return slab, cfg


# --------------------------------------------------------------------------------------
# Wrapper: one pallas_call for the whole forward pass; slice the lane-padded logits.
# --------------------------------------------------------------------------------------
def make_forward(cfg):
    kernel = functools.partial(fused_forward_kernel, cfg=cfg)

    def forward(x_p, x_b, edge_index, edge_attr, slab):
        E = edge_attr.shape[0]
        idx_row = edge_index.astype(jnp.int32)              # (2, E) row-major
        idx_col = idx_row.T                                  # (E, 2) column-major
        logits_pad = pl.pallas_call(
            kernel,
            out_shape=jax.ShapeDtypeStruct((E, LANE), F32),
            in_specs=[VMEM_SPEC] * 6,
            out_specs=VMEM_SPEC,
            compiler_params=pltpu.CompilerParams(vmem_limit_bytes=32 * 1024 * 1024),
        )(x_p, x_b, edge_attr, idx_col, idx_row, slab)
        return logits_pad[:, :cfg['num_classes']]

    return jax.jit(forward)


if __name__ == "__main__":
    key = jax.random.PRNGKey(0)
    metadata = {'pitcher': 8, 'batter': 6}
    hidden_channels, heads, edge_dim, num_classes = 16, 2, 4, 3
    Np, Nb, E = 8, 8, 16

    k_xp, k_xb, k_src, k_dst, k_ea, k_par = jax.random.split(key, 6)
    x_pitcher = jax.random.normal(k_xp, (Np, metadata['pitcher']), F32)
    x_batter = jax.random.normal(k_xb, (Nb, metadata['batter']), F32)
    src = jax.random.randint(k_src, (E,), 0, Np)
    dst = jax.random.randint(k_dst, (E,), 0, Nb)
    edge_attr = jax.random.normal(k_ea, (E, edge_dim), F32)

    ei_faces = jnp.stack([src, dst])          # ('pitcher','faces','batter'); rev = reverse

    slab, cfg = build_params(k_par, metadata, hidden_channels, heads, edge_dim, num_classes)
    forward = make_forward(cfg)

    logits = forward(x_pitcher, x_batter, ei_faces, edge_attr, slab)
    jax.block_until_ready(logits)
    assert logits.shape == (E, num_classes)
    print("KERNEL_OK")
</pallas_src>

<mosaic_0001>
module attributes {stable_mosaic.version = 11 : i64} {
  func.func @fused_forward_kernel(%arg0: memref<8x8xf32, #tpu.memory_space<vmem>>, %arg1: memref<8x6xf32, #tpu.memory_space<vmem>>, %arg2: memref<16x4xf32, #tpu.memory_space<vmem>>, %arg3: memref<16x2xi32, #tpu.memory_space<vmem>>, %arg4: memref<2x16xi32, #tpu.memory_space<vmem>>, %arg5: memref<528x128xf32, #tpu.memory_space<vmem>>, %arg6: memref<16x128xf32, #tpu.memory_space<vmem>>) attributes {dimension_semantics = [], scalar_prefetch = 0 : i64, scratch_operands = 0 : i64, tpu.core_type = #tpu.core_type<tc>} {
    %c0 = arith.constant 0 : index
    %c0_0 = arith.constant 0 : index
    %0 = vector.load %arg3[%c0, %c0_0] : memref<16x2xi32, #tpu.memory_space<vmem>>, vector<16x2xi32>
    %c0_1 = arith.constant 0 : index
    %c0_2 = arith.constant 0 : index
    %1 = vector.load %arg4[%c0_1, %c0_2] : memref<2x16xi32, #tpu.memory_space<vmem>>, vector<2x16xi32>
    %2 = tpu.iota {dimensions = array<i32: 1>} : vector<16x8xi32>
    %3 = tpu.iota {dimensions = array<i32: 1>} : vector<16x8xi32>
    %4 = tpu.iota {dimensions = array<i32: 0>} : vector<8x16xi32>
    %5 = tpu.iota {dimensions = array<i32: 0>} : vector<8x16xi32>
    %6 = vector.extract_strided_slice %0 {offsets = [0, 0], sizes = [16, 1], strides = [1, 1]} : vector<16x2xi32> to vector<16x1xi32>
    %7 = vector.broadcast %6 : vector<16x1xi32> to vector<16x8xi32>
    %8 = arith.cmpi eq, %2, %7 : vector<16x8xi32>
    %9 = arith.extui %8 : vector<16x8xi1> to vector<16x8xi32>
    %10 = arith.sitofp %9 : vector<16x8xi32> to vector<16x8xf32>
    %11 = vector.extract_strided_slice %0 {offsets = [0, 1], sizes = [16, 1], strides = [1, 1]} : vector<16x2xi32> to vector<16x1xi32>
    %12 = vector.broadcast %11 : vector<16x1xi32> to vector<16x8xi32>
    %13 = arith.cmpi eq, %3, %12 : vector<16x8xi32>
    %14 = arith.extui %13 : vector<16x8xi1> to vector<16x8xi32>
    %15 = arith.sitofp %14 : vector<16x8xi32> to vector<16x8xf32>
    %16 = vector.extract_strided_slice %1 {offsets = [0, 0], sizes = [1, 16], strides = [1, 1]} : vector<2x16xi32> to vector<1x16xi32>
    %17 = vector.broadcast %16 : vector<1x16xi32> to vector<8x16xi32>
    %18 = arith.cmpi eq, %4, %17 : vector<8x16xi32>
    %19 = arith.extui %18 : vector<8x16xi1> to vector<8x16xi32>
    %20 = arith.sitofp %19 : vector<8x16xi32> to vector<8x16xf32>
    %21 = vector.extract_strided_slice %1 {offsets = [1, 0], sizes = [1, 16], strides = [1, 1]} : vector<2x16xi32> to vector<1x16xi32>
    %22 = vector.broadcast %21 : vector<1x16xi32> to vector<8x16xi32>
    %23 = arith.cmpi eq, %5, %22 : vector<8x16xi32>
    %24 = arith.extui %23 : vector<8x16xi1> to vector<8x16xi32>
    %25 = arith.sitofp %24 : vector<8x16xi32> to vector<8x16xf32>
    %c0_3 = arith.constant 0 : index
    %c0_4 = arith.constant 0 : index
    %26 = vector.load %arg0[%c0_3, %c0_4] : memref<8x8xf32, #tpu.memory_space<vmem>>, vector<8x8xf32>
    %c0_5 = arith.constant 0 : index
    %c0_6 = arith.constant 0 : index
    %27 = vector.load %arg1[%c0_5, %c0_6] : memref<8x6xf32, #tpu.memory_space<vmem>>, vector<8x6xf32>
    %c0_7 = arith.constant 0 : index
    %c0_8 = arith.constant 0 : index
    %28 = vector.load %arg2[%c0_7, %c0_8] : memref<16x4xf32, #tpu.memory_space<vmem>>, vector<16x4xf32>
    %c0_9 = arith.constant 0 : index
    %c0_10 = arith.constant 0 : index
    %29 = vector.load %arg5[%c0_9, %c0_10] : memref<528x128xf32, #tpu.memory_space<vmem>>, vector<8x128xf32>
    %30 = vector.extract_strided_slice %29 {offsets = [0, 0], sizes = [8, 32], strides = [1, 1]} : vector<8x128xf32> to vector<8x32xf32>
    %cst = arith.constant dense<0.000000e+00> : vector<8x32xf32>
    %31 = tpu.matmul %26, %30, %cst {dimension_numbers = #tpu.dot_dimension_numbers<[1], [0], [0], [1], [0, 0, 1, 1], [], []>} : vector<8x8xf32>, vector<8x32xf32>, vector<8x32xf32> -> vector<8x32xf32>
    %c8 = arith.constant 8 : index
    %c0_11 = arith.constant 0 : index
    %32 = vector.load %arg5[%c8, %c0_11] : memref<528x128xf32, #tpu.memory_space<vmem>>, vector<1x128xf32>
    %33 = vector.extract_strided_slice %32 {offsets = [0, 0], sizes = [1, 32], strides = [1, 1]} : vector<1x128xf32> to vector<1x32xf32>
    %34 = vector.broadcast %33 : vector<1x32xf32> to vector<8x32xf32>
    %35 = arith.addf %31, %34 : vector<8x32xf32>
    %c16 = arith.constant 16 : index
    %c0_12 = arith.constant 0 : index
    %36 = vector.load %arg5[%c16, %c0_12] : memref<528x128xf32, #tpu.memory_space<vmem>>, vector<6x128xf32>
    %37 = vector.extract_strided_slice %36 {offsets = [0, 0], sizes = [6, 32], strides = [1, 1]} : vector<6x128xf32> to vector<6x32xf32>
    %cst_13 = arith.constant dense<0.000000e+00> : vector<8x32xf32>
    %38 = tpu.matmul %27, %37, %cst_13 {dimension_numbers = #tpu.dot_dimension_numbers<[1], [0], [0], [1], [0, 0, 1, 1], [], []>} : vector<8x6xf32>, vector<6x32xf32>, vector<8x32xf32> -> vector<8x32xf32>
    %c24 = arith.constant 24 : index
    %c0_14 = arith.constant 0 : index
    %39 = vector.load %arg5[%c24, %c0_14] : memref<528x128xf32, #tpu.memory_space<vmem>>, vector<1x128xf32>
    %40 = vector.extract_strided_slice %39 {offsets = [0, 0], sizes = [1, 32], strides = [1, 1]} : vector<1x128xf32> to vector<1x32xf32>
    %41 = vector.broadcast %40 : vector<1x32xf32> to vector<8x32xf32>
    %42 = arith.addf %38, %41 : vector<8x32xf32>
    %c32 = arith.constant 32 : index
    %c0_15 = arith.constant 0 : index
    %43 = vector.load %arg5[%c32, %c0_15] : memref<528x128xf32, #tpu.memory_space<vmem>>, vector<4x128xf32>
    %44 = vector.extract_strided_slice %43 {offsets = [0, 0], sizes = [4, 32], strides = [1, 1]} : vector<4x128xf32> to vector<4x32xf32>
    %cst_16 = arith.constant dense<0.000000e+00> : vector<16x32xf32>
    %45 = tpu.matmul %28, %44, %cst_16 {dimension_numbers = #tpu.dot_dimension_numbers<[1], [0], [0], [1], [0, 0, 1, 1], [], []>} : vector<16x4xf32>, vector<4x32xf32>, vector<16x32xf32> -> vector<16x32xf32>
    %cst_17 = arith.constant dense<0.000000e+00> : vector<16x32xf32>
    %46 = tpu.matmul %10, %35, %cst_17 {dimension_numbers = #tpu.dot_dimension_numbers<[1], [0], [0], [1], [0, 0, 1, 1], [], []>} : vector<16x8xf32>, vector<8x32xf32>, vector<16x32xf32> -> vector<16x32xf32>
    %cst_18 = arith.constant dense<0.000000e+00> : vector<16x32xf32>
    %47 = tpu.matmul %15, %42, %cst_18 {dimension_numbers = #tpu.dot_dimension_numbers<[1], [0], [0], [1], [0, 0, 1, 1], [], []>} : vector<16x8xf32>, vector<8x32xf32>, vector<16x32xf32> -> vector<16x32xf32>
    %48 = arith.addf %46, %47 : vector<16x32xf32>
    %49 = arith.addf %48, %45 : vector<16x32xf32>
    %cst_19 = arith.constant 0.000000e+00 : f32
    %50 = vector.broadcast %cst_19 : f32 to vector<16x32xf32>
    %51 = arith.cmpf ogt, %49, %50 : vector<16x32xf32>
    %cst_20 = arith.constant 2.000000e-01 : f32
    %52 = vector.broadcast %cst_20 : f32 to vector<16x32xf32>
    %53 = arith.mulf %52, %49 : vector<16x32xf32>
    %54 = arith.select %51, %49, %53 : vector<16x32xi1>, vector<16x32xf32>
    %c40 = arith.constant 40 : index
    %c0_21 = arith.constant 0 : index
    %55 = vector.load %arg5[%c40, %c0_21] : memref<528x128xf32, #tpu.memory_space<vmem>>, vector<32x128xf32>
    %56 = vector.extract_strided_slice %55 {offsets = [0, 0], sizes = [32, 2], strides = [1, 1]} : vector<32x128xf32> to vector<32x2xf32>
    %cst_22 = arith.constant dense<0.000000e+00> : vector<16x2xf32>
    %57 = tpu.matmul %54, %56, %cst_22 {dimension_numbers = #tpu.dot_dimension_numbers<[1], [0], [0], [1], [0, 0, 1, 1], [], []>} : vector<16x32xf32>, vector<32x2xf32>, vector<16x2xf32> -> vector<16x2xf32>
    %cst_23 = arith.constant dense<0xFF800000> : vector<2xf32>
    %58 = vector.multi_reduction <maximumf>, %57, %cst_23 [0] : vector<16x2xf32> to vector<2xf32>
    %59 = vector.shape_cast %58 : vector<2xf32> to vector<1x2xf32>
    %60 = vector.broadcast %59 : vector<1x2xf32> to vector<16x2xf32>
    %61 = arith.subf %57, %60 : vector<16x2xf32>
    %62 = math.exp %61 : vector<16x2xf32>
    %cst_24 = arith.constant dense<0.000000e+00> : vector<8x2xf32>
    %63 = tpu.matmul %25, %62, %cst_24 {dimension_numbers = #tpu.dot_dimension_numbers<[1], [0], [0], [1], [0, 0, 1, 1], [], []>} : vector<8x16xf32>, vector<16x2xf32>, vector<8x2xf32> -> vector<8x2xf32>
    %cst_25 = arith.constant dense<0.000000e+00> : vector<16x2xf32>
    %64 = tpu.matmul %15, %63, %cst_25 {dimension_numbers = #tpu.dot_dimension_numbers<[1], [0], [0], [1], [0, 0, 1, 1], [], []>} : vector<16x8xf32>, vector<8x2xf32>, vector<16x2xf32> -> vector<16x2xf32>
    %cst_26 = arith.constant 9.99999968E-21 : f32
    %65 = vector.broadcast %cst_26 : f32 to vector<16x2xf32>
    %66 = arith.maximumf %64, %65 : vector<16x2xf32>
    %67 = arith.divf %62, %66 : vector<16x2xf32>
    %68 = vector.extract_strided_slice %46 {offsets = [0, 0], sizes = [16, 16], strides = [1, 1]} : vector<16x32xf32> to vector<16x16xf32>
    %69 = vector.extract_strided_slice %67 {offsets = [0, 0], sizes = [16, 1], strides = [1, 1]} : vector<16x2xf32> to vector<16x1xf32>
    %70 = vector.broadcast %69 : vector<16x1xf32> to vector<16x16xf32>
    %71 = arith.mulf %68, %70 : vector<16x16xf32>
    %72 = vector.extract_strided_slice %46 {offsets = [0, 16], sizes = [16, 16], strides = [1, 1]} : vector<16x32xf32> to vector<16x16xf32>
    %73 = vector.extract_strided_slice %67 {offsets = [0, 1], sizes = [16, 1], strides = [1, 1]} : vector<16x2xf32> to vector<16x1xf32>
    %74 = vector.broadcast %73 : vector<16x1xf32> to vector<16x16xf32>
    %75 = arith.mulf %72, %74 : vector<16x16xf32>
    %76 = tpu.concatenate %71, %75 in 1 : vector<16x16xf32>, vector<16x16xf32> -> vector<16x32xf32>
    %cst_27 = arith.constant dense<0.000000e+00> : vector<8x32xf32>
    %77 = tpu.matmul %25, %76, %cst_27 {dimension_numbers = #tpu.dot_dimension_numbers<[1], [0], [0], [1], [0, 0, 1, 1], [], []>} : vector<8x16xf32>, vector<16x32xf32>, vector<8x32xf32> -> vector<8x32xf32>
    %c72 = arith.constant 72 : index
    %c0_28 = arith.constant 0 : index
    %78 = vector.load %arg5[%c72, %c0_28] : memref<528x128xf32, #tpu.memory_space<vmem>>, vector<1x128xf32>
    %79 = vector.extract_strided_slice %78 {offsets = [0, 0], sizes = [1, 32], strides = [1, 1]} : vector<1x128xf32> to vector<1x32xf32>
    %80 = vector.broadcast %79 : vector<1x32xf32> to vector<8x32xf32>
    %81 = arith.addf %77, %80 : vector<8x32xf32>
    %cst_29 = arith.constant 0.000000e+00 : f32
    %82 = vector.broadcast %cst_29 : f32 to vector<8x32xf32>
    %83 = arith.maximumf %81, %82 : vector<8x32xf32>
    %c80 = arith.constant 80 : index
    %c0_30 = arith.constant 0 : index
    %84 = vector.load %arg5[%c80, %c0_30] : memref<528x128xf32, #tpu.memory_space<vmem>>, vector<6x128xf32>
    %85 = vector.extract_strided_slice %84 {offsets = [0, 0], sizes = [6, 32], strides = [1, 1]} : vector<6x128xf32> to vector<6x32xf32>
    %cst_31 = arith.constant dense<0.000000e+00> : vector<8x32xf32>
    %86 = tpu.matmul %27, %85, %cst_31 {dimension_numbers = #tpu.dot_dimension_numbers<[1], [0], [0], [1], [0, 0, 1, 1], [], []>} : vector<8x6xf32>, vector<6x32xf32>, vector<8x32xf32> -> vector<8x32xf32>
    %c88 = arith.constant 88 : index
    %c0_32 = arith.constant 0 : index
    %87 = vector.load %arg5[%c88, %c0_32] : memref<528x128xf32, #tpu.memory_space<vmem>>, vector<1x128xf32>
    %88 = vector.extract_strided_slice %87 {offsets = [0, 0], sizes = [1, 32], strides = [1, 1]} : vector<1x128xf32> to vector<1x32xf32>
    %89 = vector.broadcast %88 : vector<1x32xf32> to vector<8x32xf32>
    %90 = arith.addf %86, %89 : vector<8x32xf32>
    %c96 = arith.constant 96 : index
    %c0_33 = arith.constant 0 : index
    %91 = vector.load %arg5[%c96, %c0_33] : memref<528x128xf32, #tpu.memory_space<vmem>>, vector<8x128xf32>
    %92 = vector.extract_strided_slice %91 {offsets = [0, 0], sizes = [8, 32], strides = [1, 1]} : vector<8x128xf32> to vector<8x32xf32>
    %cst_34 = arith.constant dense<0.000000e+00> : vector<8x32xf32>
    %93 = tpu.matmul %26, %92, %cst_34 {dimension_numbers = #tpu.dot_dimension_numbers<[1], [0], [0], [1], [0, 0, 1, 1], [], []>} : vector<8x8xf32>, vector<8x32xf32>, vector<8x32xf32> -> vector<8x32xf32>
    %c104 = arith.constant 104 : index
    %c0_35 = arith.constant 0 : index
    %94 = vector.load %arg5[%c104, %c0_35] : memref<528x128xf32, #tpu.memory_space<vmem>>, vector<1x128xf32>
    %95 = vector.extract_strided_slice %94 {offsets = [0, 0], sizes = [1, 32], strides = [1, 1]} : vector<1x128xf32> to vector<1x32xf32>
    %96 = vector.broadcast %95 : vector<1x32xf32> to vector<8x32xf32>
    %97 = arith.addf %93, %96 : vector<8x32xf32>
    %c112 = arith.constant 112 : index
    %c0_36 = arith.constant 0 : index
    %98 = vector.load %arg5[%c112, %c0_36] : memref<528x128xf32, #tpu.memory_space<vmem>>, vector<4x128xf32>
    %99 = vector.extract_strided_slice %98 {offsets = [0, 0], sizes = [4, 32], strides = [1, 1]} : vector<4x128xf32> to vector<4x32xf32>
    %cst_37 = arith.constant dense<0.000000e+00> : vector<16x32xf32>
    %100 = tpu.matmul %28, %99, %cst_37 {dimension_numbers = #tpu.dot_dimension_numbers<[1], [0], [0], [1], [0, 0, 1, 1], [], []>} : vector<16x4xf32>, vector<4x32xf32>, vector<16x32xf32> -> vector<16x32xf32>
    %cst_38 = arith.constant dense<0.000000e+00> : vector<16x32xf32>
    %101 = tpu.matmul %15, %90, %cst_38 {dimension_numbers = #tpu.dot_dimension_numbers<[1], [0], [0], [1], [0, 0, 1, 1], [], []>} : vector<16x8xf32>, vector<8x32xf32>, vector<16x32xf32> -> vector<16x32xf32>
    %cst_39 = arith.constant dense<0.000000e+00> : vector<16x32xf32>
    %102 = tpu.matmul %10, %97, %cst_39 {dimension_numbers = #tpu.dot_dimension_numbers<[1], [0], [0], [1], [0, 0, 1, 1], [], []>} : vector<16x8xf32>, vector<8x32xf32>, vector<16x32xf32> -> vector<16x32xf32>
    %103 = arith.addf %101, %102 : vector<16x32xf32>
    %104 = arith.addf %103, %100 : vector<16x32xf32>
    %cst_40 = arith.constant 0.000000e+00 : f32
    %105 = vector.broadcast %cst_40 : f32 to vector<16x32xf32>
    %106 = arith.cmpf ogt, %104, %105 : vector<16x32xf32>
    %cst_41 = arith.constant 2.000000e-01 : f32
    %107 = vector.broadcast %cst_41 : f32 to vector<16x32xf32>
    %108 = arith.mulf %107, %104 : vector<16x32xf32>
    %109 = arith.select %106, %104, %108 : vector<16x32xi1>, vector<16x32xf32>
    %c120 = arith.constant 120 : index
    %c0_42 = arith.constant 0 : index
    %110 = vector.load %arg5[%c120, %c0_42] : memref<528x128xf32, #tpu.memory_space<vmem>>, vector<32x128xf32>
    %111 = vector.extract_strided_slice %110 {offsets = [0, 0], sizes = [32, 2], strides = [1, 1]} : vector<32x128xf32> to vector<32x2xf32>
    %cst_43 = arith.constant dense<0.000000e+00> : vector<16x2xf32>
    %112 = tpu.matmul %109, %111, %cst_43 {dimension_numbers = #tpu.dot_dimension_numbers<[1], [0], [0], [1], [0, 0, 1, 1], [], []>} : vector<16x32xf32>, vector<32x2xf32>, vector<16x2xf32> -> vector<16x2xf32>
    %cst_44 = arith.constant dense<0xFF800000> : vector<2xf32>
    %113 = vector.multi_reduction <maximumf>, %112, %cst_44 [0] : vector<16x2xf32> to vector<2xf32>
    %114 = vector.shape_cast %113 : vector<2xf32> to vector<1x2xf32>
    %115 = vector.broadcast %114 : vector<1x2xf32> to vector<16x2xf32>
    %116 = arith.subf %112, %115 : vector<16x2xf32>
    %117 = math.exp %116 : vector<16x2xf32>
    %cst_45 = arith.constant dense<0.000000e+00> : vector<8x2xf32>
    %118 = tpu.matmul %20, %117, %cst_45 {dimension_numbers = #tpu.dot_dimension_numbers<[1], [0], [0], [1], [0, 0, 1, 1], [], []>} : vector<8x16xf32>, vector<16x2xf32>, vector<8x2xf32> -> vector<8x2xf32>
    %cst_46 = arith.constant dense<0.000000e+00> : vector<16x2xf32>
    %119 = tpu.matmul %10, %118, %cst_46 {dimension_numbers = #tpu.dot_dimension_numbers<[1], [0], [0], [1], [0, 0, 1, 1], [], []>} : vector<16x8xf32>, vector<8x2xf32>, vector<16x2xf32> -> vector<16x2xf32>
    %cst_47 = arith.constant 9.99999968E-21 : f32
    %120 = vector.broadcast %cst_47 : f32 to vector<16x2xf32>
    %121 = arith.maximumf %119, %120 : vector<16x2xf32>
    %122 = arith.divf %117, %121 : vector<16x2xf32>
    %123 = vector.extract_strided_slice %101 {offsets = [0, 0], sizes = [16, 16], strides = [1, 1]} : vector<16x32xf32> to vector<16x16xf32>
    %124 = vector.extract_strided_slice %122 {offsets = [0, 0], sizes = [16, 1], strides = [1, 1]} : vector<16x2xf32> to vector<16x1xf32>
    %125 = vector.broadcast %124 : vector<16x1xf32> to vector<16x16xf32>
    %126 = arith.mulf %123, %125 : vector<16x16xf32>
    %127 = vector.extract_strided_slice %101 {offsets = [0, 16], sizes = [16, 16], strides = [1, 1]} : vector<16x32xf32> to vector<16x16xf32>
    %128 = vector.extract_strided_slice %122 {offsets = [0, 1], sizes = [16, 1], strides = [1, 1]} : vector<16x2xf32> to vector<16x1xf32>
    %129 = vector.broadcast %128 : vector<16x1xf32> to vector<16x16xf32>
    %130 = arith.mulf %127, %129 : vector<16x16xf32>
    %131 = tpu.concatenate %126, %130 in 1 : vector<16x16xf32>, vector<16x16xf32> -> vector<16x32xf32>
    %cst_48 = arith.constant dense<0.000000e+00> : vector<8x32xf32>
    %132 = tpu.matmul %20, %131, %cst_48 {dimension_numbers = #tpu.dot_dimension_numbers<[1], [0], [0], [1], [0, 0, 1, 1], [], []>} : vector<8x16xf32>, vector<16x32xf32>, vector<8x32xf32> -> vector<8x32xf32>
    %c152 = arith.constant 152 : index
    %c0_49 = arith.constant 0 : index
    %133 = vector.load %arg5[%c152, %c0_49] : memref<528x128xf32, #tpu.memory_space<vmem>>, vector<1x128xf32>
    %134 = vector.extract_strided_slice %133 {offsets = [0, 0], sizes = [1, 32], strides = [1, 1]} : vector<1x128xf32> to vector<1x32xf32>
    %135 = vector.broadcast %134 : vector<1x32xf32> to vector<8x32xf32>
    %136 = arith.addf %132, %135 : vector<8x32xf32>
    %cst_50 = arith.constant 0.000000e+00 : f32
    %137 = vector.broadcast %cst_50 : f32 to vector<8x32xf32>
    %138 = arith.maximumf %136, %137 : vector<8x32xf32>
    %c160 = arith.constant 160 : index
    %c0_51 = arith.constant 0 : index
    %139 = vector.load %arg5[%c160, %c0_51] : memref<528x128xf32, #tpu.memory_space<vmem>>, vector<32x128xf32>
    %140 = vector.extract_strided_slice %139 {offsets = [0, 0], sizes = [32, 32], strides = [1, 1]} : vector<32x128xf32> to vector<32x32xf32>
    %cst_52 = arith.constant dense<0.000000e+00> : vector<8x32xf32>
    %141 = tpu.matmul %138, %140, %cst_52 {dimension_numbers = #tpu.dot_dimension_numbers<[1], [0], [0], [1], [0, 0, 1, 1], [], []>} : vector<8x32xf32>, vector<32x32xf32>, vector<8x32xf32> -> vector<8x32xf32>
    %c192 = arith.constant 192 : index
    %c0_53 = arith.constant 0 : index
    %142 = vector.load %arg5[%c192, %c0_53] : memref<528x128xf32, #tpu.memory_space<vmem>>, vector<1x128xf32>
    %143 = vector.extract_strided_slice %142 {offsets = [0, 0], sizes = [1, 32], strides = [1, 1]} : vector<1x128xf32> to vector<1x32xf32>
    %144 = vector.broadcast %143 : vector<1x32xf32> to vector<8x32xf32>
    %145 = arith.addf %141, %144 : vector<8x32xf32>
    %c200 = arith.constant 200 : index
    %c0_54 = arith.constant 0 : index
    %146 = vector.load %arg5[%c200, %c0_54] : memref<528x128xf32, #tpu.memory_space<vmem>>, vector<32x128xf32>
    %147 = vector.extract_strided_slice %146 {offsets = [0, 0], sizes = [32, 32], strides = [1, 1]} : vector<32x128xf32> to vector<32x32xf32>
    %cst_55 = arith.constant dense<0.000000e+00> : vector<8x32xf32>
    %148 = tpu.matmul %83, %147, %cst_55 {dimension_numbers = #tpu.dot_dimension_numbers<[1], [0], [0], [1], [0, 0, 1, 1], [], []>} : vector<8x32xf32>, vector<32x32xf32>, vector<8x32xf32> -> vector<8x32xf32>
    %c232 = arith.constant 232 : index
    %c0_56 = arith.constant 0 : index
    %149 = vector.load %arg5[%c232, %c0_56] : memref<528x128xf32, #tpu.memory_space<vmem>>, vector<1x128xf32>
    %150 = vector.extract_strided_slice %149 {offsets = [0, 0], sizes = [1, 32], strides = [1, 1]} : vector<1x128xf32> to vector<1x32xf32>
    %151 = vector.broadcast %150 : vector<1x32xf32> to vector<8x32xf32>
    %152 = arith.addf %148, %151 : vector<8x32xf32>
    %c240 = arith.constant 240 : index
    %c0_57 = arith.constant 0 : index
    %153 = vector.load %arg5[%c240, %c0_57] : memref<528x128xf32, #tpu.memory_space<vmem>>, vector<4x128xf32>
    %154 = vector.extract_strided_slice %153 {offsets = [0, 0], sizes = [4, 32], strides = [1, 1]} : vector<4x128xf32> to vector<4x32xf32>
    %cst_58 = arith.constant dense<0.000000e+00> : vector<16x32xf32>
    %155 = tpu.matmul %28, %154, %cst_58 {dimension_numbers = #tpu.dot_dimension_numbers<[1], [0], [0], [1], [0, 0, 1, 1], [], []>} : vector<16x4xf32>, vector<4x32xf32>, vector<16x32xf32> -> vector<16x32xf32>
    %cst_59 = arith.constant dense<0.000000e+00> : vector<16x32xf32>
    %156 = tpu.matmul %10, %145, %cst_59 {dimension_numbers = #tpu.dot_dimension_numbers<[1], [0], [0], [1], [0, 0, 1, 1], [], []>} : vector<16x8xf32>, vector<8x32xf32>, vector<16x32xf32> -> vector<16x32xf32>
    %cst_60 = arith.constant dense<0.000000e+00> : vector<16x32xf32>
    %157 = tpu.matmul %15, %152, %cst_60 {dimension_numbers = #tpu.dot_dimension_numbers<[1], [0], [0], [1], [0, 0, 1, 1], [], []>} : vector<16x8xf32>, vector<8x32xf32>, vector<16x32xf32> -> vector<16x32xf32>
    %158 = arith.addf %156, %157 : vector<16x32xf32>
    %159 = arith.addf %158, %155 : vector<16x32xf32>
    %cst_61 = arith.constant 0.000000e+00 : f32
    %160 = vector.broadcast %cst_61 : f32 to vector<16x32xf32>
    %161 = arith.cmpf ogt, %159, %160 : vector<16x32xf32>
    %cst_62 = arith.constant 2.000000e-01 : f32
    %162 = vector.broadcast %cst_62 : f32 to vector<16x32xf32>
    %163 = arith.mulf %162, %159 : vector<16x32xf32>
    %164 = arith.select %161, %159, %163 : vector<16x32xi1>, vector<16x32xf32>
    %c248 = arith.constant 248 : index
    %c0_63 = arith.constant 0 : index
    %165 = vector.load %arg5[%c248, %c0_63] : memref<528x128xf32, #tpu.memory_space<vmem>>, vector<32x128xf32>
    %166 = vector.extract_strided_slice %165 {offsets = [0, 0], sizes = [32, 2], strides = [1, 1]} : vector<32x128xf32> to vector<32x2xf32>
    %cst_64 = arith.constant dense<0.000000e+00> : vector<16x2xf32>
    %167 = tpu.matmul %164, %166, %cst_64 {dimension_numbers = #tpu.dot_dimension_numbers<[1], [0], [0], [1], [0, 0, 1, 1], [], []>} : vector<16x32xf32>, vector<32x2xf32>, vector<16x2xf32> -> vector<16x2xf32>
    %cst_65 = arith.constant dense<0xFF800000> : vector<2xf32>
    %168 = vector.multi_reduction <maximumf>, %167, %cst_65 [0] : vector<16x2xf32> to vector<2xf32>
    %169 = vector.shape_cast %168 : vector<2xf32> to vector<1x2xf32>
    %170 = vector.broadcast %169 : vector<1x2xf32> to vector<16x2xf32>
    %171 = arith.subf %167, %170 : vector<16x2xf32>
    %172 = math.exp %171 : vector<16x2xf32>
    %cst_66 = arith.constant dense<0.000000e+00> : vector<8x2xf32>
    %173 = tpu.matmul %25, %172, %cst_66 {dimension_numbers = #tpu.dot_dimension_numbers<[1], [0], [0], [1], [0, 0, 1, 1], [], []>} : vector<8x16xf32>, vector<16x2xf32>, vector<8x2xf32> -> vector<8x2xf32>
    %cst_67 = arith.constant dense<0.000000e+00> : vector<16x2xf32>
    %174 = tpu.matmul %15, %173, %cst_67 {dimension_numbers = #tpu.dot_dimension_numbers<[1], [0], [0], [1], [0, 0, 1, 1], [], []>} : vector<16x8xf32>, vector<8x2xf32>, vector<16x2xf32> -> vector<16x2xf32>
    %cst_68 = arith.constant 9.99999968E-21 : f32
    %175 = vector.broadcast %cst_68 : f32 to vector<16x2xf32>
    %176 = arith.maximumf %174, %175 : vector<16x2xf32>
    %177 = arith.divf %172, %176 : vector<16x2xf32>
    %178 = vector.extract_strided_slice %156 {offsets = [0, 0], sizes = [16, 16], strides = [1, 1]} : vector<16x32xf32> to vector<16x16xf32>
    %179 = vector.extract_strided_slice %177 {offsets = [0, 0], sizes = [16, 1], strides = [1, 1]} : vector<16x2xf32> to vector<16x1xf32>
    %180 = vector.broadcast %179 : vector<16x1xf32> to vector<16x16xf32>
    %181 = arith.mulf %178, %180 : vector<16x16xf32>
    %182 = vector.extract_strided_slice %156 {offsets = [0, 16], sizes = [16, 16], strides = [1, 1]} : vector<16x32xf32> to vector<16x16xf32>
    %183 = vector.extract_strided_slice %177 {offsets = [0, 1], sizes = [16, 1], strides = [1, 1]} : vector<16x2xf32> to vector<16x1xf32>
    %184 = vector.broadcast %183 : vector<16x1xf32> to vector<16x16xf32>
    %185 = arith.mulf %182, %184 : vector<16x16xf32>
    %cst_69 = arith.constant 0.000000e+00 : f32
    %186 = vector.broadcast %cst_69 : f32 to vector<16x16xf32>
    %187 = arith.addf %186, %181 : vector<16x16xf32>
    %188 = arith.addf %187, %185 : vector<16x16xf32>
    %cst_70 = arith.constant 5.000000e-01 : f32
    %189 = vector.broadcast %cst_70 : f32 to vector<16x16xf32>
    %190 = arith.mulf %188, %189 : vector<16x16xf32>
    %cst_71 = arith.constant dense<0.000000e+00> : vector<8x16xf32>
    %191 = tpu.matmul %25, %190, %cst_71 {dimension_numbers = #tpu.dot_dimension_numbers<[1], [0], [0], [1], [0, 0, 1, 1], [], []>} : vector<8x16xf32>, vector<16x16xf32>, vector<8x16xf32> -> vector<8x16xf32>
    %c280 = arith.constant 280 : index
    %c0_72 = arith.constant 0 : index
    %192 = vector.load %arg5[%c280, %c0_72] : memref<528x128xf32, #tpu.memory_space<vmem>>, vector<1x128xf32>
    %193 = vector.extract_strided_slice %192 {offsets = [0, 0], sizes = [1, 16], strides = [1, 1]} : vector<1x128xf32> to vector<1x16xf32>
    %194 = vector.broadcast %193 : vector<1x16xf32> to vector<8x16xf32>
    %195 = arith.addf %191, %194 : vector<8x16xf32>
    %cst_73 = arith.constant 0.000000e+00 : f32
    %196 = vector.broadcast %cst_73 : f32 to vector<8x16xf32>
    %197 = arith.maximumf %195, %196 : vector<8x16xf32>
    %c288 = arith.constant 288 : index
    %c0_74 = arith.constant 0 : index
    %198 = vector.load %arg5[%c288, %c0_74] : memref<528x128xf32, #tpu.memory_space<vmem>>, vector<32x128xf32>
    %199 = vector.extract_strided_slice %198 {offsets = [0, 0], sizes = [32, 32], strides = [1, 1]} : vector<32x128xf32> to vector<32x32xf32>
    %cst_75 = arith.constant dense<0.000000e+00> : vector<8x32xf32>
    %200 = tpu.matmul %83, %199, %cst_75 {dimension_numbers = #tpu.dot_dimension_numbers<[1], [0], [0], [1], [0, 0, 1, 1], [], []>} : vector<8x32xf32>, vector<32x32xf32>, vector<8x32xf32> -> vector<8x32xf32>
    %c320 = arith.constant 320 : index
    %c0_76 = arith.constant 0 : index
    %201 = vector.load %arg5[%c320, %c0_76] : memref<528x128xf32, #tpu.memory_space<vmem>>, vector<1x128xf32>
    %202 = vector.extract_strided_slice %201 {offsets = [0, 0], sizes = [1, 32], strides = [1, 1]} : vector<1x128xf32> to vector<1x32xf32>
    %203 = vector.broadcast %202 : vector<1x32xf32> to vector<8x32xf32>
    %204 = arith.addf %200, %203 : vector<8x32xf32>
    %c328 = arith.constant 328 : index
    %c0_77 = arith.constant 0 : index
    %205 = vector.load %arg5[%c328, %c0_77] : memref<528x128xf32, #tpu.memory_space<vmem>>, vector<32x128xf32>
    %206 = vector.extract_strided_slice %205 {offsets = [0, 0], sizes = [32, 32], strides = [1, 1]} : vector<32x128xf32> to vector<32x32xf32>
    %cst_78 = arith.constant dense<0.000000e+00> : vector<8x32xf32>
    %207 = tpu.matmul %138, %206, %cst_78 {dimension_numbers = #tpu.dot_dimension_numbers<[1], [0], [0], [1], [0, 0, 1, 1], [], []>} : vector<8x32xf32>, vector<32x32xf32>, vector<8x32xf32> -> vector<8x32xf32>
    %c360 = arith.constant 360 : index
    %c0_79 = arith.constant 0 : index
    %208 = vector.load %arg5[%c360, %c0_79] : memref<528x128xf32, #tpu.memory_space<vmem>>, vector<1x128xf32>
    %209 = vector.extract_strided_slice %208 {offsets = [0, 0], sizes = [1, 32], strides = [1, 1]} : vector<1x128xf32> to vector<1x32xf32>
    %210 = vector.broadcast %209 : vector<1x32xf32> to vector<8x32xf32>
    %211 = arith.addf %207, %210 : vector<8x32xf32>
    %c368 = arith.constant 368 : index
    %c0_80 = arith.constant 0 : index
    %212 = vector.load %arg5[%c368, %c0_80] : memref<528x128xf32, #tpu.memory_space<vmem>>, vector<4x128xf32>
    %213 = vector.extract_strided_slice %212 {offsets = [0, 0], sizes = [4, 32], strides = [1, 1]} : vector<4x128xf32> to vector<4x32xf32>
    %cst_81 = arith.constant dense<0.000000e+00> : vector<16x32xf32>
    %214 = tpu.matmul %28, %213, %cst_81 {dimension_numbers = #tpu.dot_dimension_numbers<[1], [0], [0], [1], [0, 0, 1, 1], [], []>} : vector<16x4xf32>, vector<4x32xf32>, vector<16x32xf32> -> vector<16x32xf32>
    %cst_82 = arith.constant dense<0.000000e+00> : vector<16x32xf32>
    %215 = tpu.matmul %15, %204, %cst_82 {dimension_numbers = #tpu.dot_dimension_numbers<[1], [0], [0], [1], [0, 0, 1, 1], [], []>} : vector<16x8xf32>, vector<8x32xf32>, vector<16x32xf32> -> vector<16x32xf32>
    %cst_83 = arith.constant dense<0.000000e+00> : vector<16x32xf32>
    %216 = tpu.matmul %10, %211, %cst_83 {dimension_numbers = #tpu.dot_dimension_numbers<[1], [0], [0], [1], [0, 0, 1, 1], [], []>} : vector<16x8xf32>, vector<8x32xf32>, vector<16x32xf32> -> vector<16x32xf32>
    %217 = arith.addf %215, %216 : vector<16x32xf32>
    %218 = arith.addf %217, %214 : vector<16x32xf32>
    %cst_84 = arith.constant 0.000000e+00 : f32
    %219 = vector.broadcast %cst_84 : f32 to vector<16x32xf32>
    %220 = arith.cmpf ogt, %218, %219 : vector<16x32xf32>
    %cst_85 = arith.constant 2.000000e-01 : f32
    %221 = vector.broadcast %cst_85 : f32 to vector<16x32xf32>
    %222 = arith.mulf %221, %218 : vector<16x32xf32>
    %223 = arith.select %220, %218, %222 : vector<16x32xi1>, vector<16x32xf32>
    %c376 = arith.constant 376 : index
    %c0_86 = arith.constant 0 : index
    %224 = vector.load %arg5[%c376, %c0_86] : memref<528x128xf32, #tpu.memory_space<vmem>>, vector<32x128xf32>
    %225 = vector.extract_strided_slice %224 {offsets = [0, 0], sizes = [32, 2], strides = [1, 1]} : vector<32x128xf32> to vector<32x2xf32>
    %cst_87 = arith.constant dense<0.000000e+00> : vector<16x2xf32>
    %226 = tpu.matmul %223, %225, %cst_87 {dimension_numbers = #tpu.dot_dimension_numbers<[1], [0], [0], [1], [0, 0, 1, 1], [], []>} : vector<16x32xf32>, vector<32x2xf32>, vector<16x2xf32> -> vector<16x2xf32>
    %cst_88 = arith.constant dense<0xFF800000> : vector<2xf32>
    %227 = vector.multi_reduction <maximumf>, %226, %cst_88 [0] : vector<16x2xf32> to vector<2xf32>
    %228 = vector.shape_cast %227 : vector<2xf32> to vector<1x2xf32>
    %229 = vector.broadcast %228 : vector<1x2xf32> to vector<16x2xf32>
    %230 = arith.subf %226, %229 : vector<16x2xf32>
    %231 = math.exp %230 : vector<16x2xf32>
    %cst_89 = arith.constant dense<0.000000e+00> : vector<8x2xf32>
    %232 = tpu.matmul %20, %231, %cst_89 {dimension_numbers = #tpu.dot_dimension_numbers<[1], [0], [0], [1], [0, 0, 1, 1], [], []>} : vector<8x16xf32>, vector<16x2xf32>, vector<8x2xf32> -> vector<8x2xf32>
    %cst_90 = arith.constant dense<0.000000e+00> : vector<16x2xf32>
    %233 = tpu.matmul %10, %232, %cst_90 {dimension_numbers = #tpu.dot_dimension_numbers<[1], [0], [0], [1], [0, 0, 1, 1], [], []>} : vector<16x8xf32>, vector<8x2xf32>, vector<16x2xf32> -> vector<16x2xf32>
    %cst_91 = arith.constant 9.99999968E-21 : f32
    %234 = vector.broadcast %cst_91 : f32 to vector<16x2xf32>
    %235 = arith.maximumf %233, %234 : vector<16x2xf32>
    %236 = arith.divf %231, %235 : vector<16x2xf32>
    %237 = vector.extract_strided_slice %215 {offsets = [0, 0], sizes = [16, 16], strides = [1, 1]} : vector<16x32xf32> to vector<16x16xf32>
    %238 = vector.extract_strided_slice %236 {offsets = [0, 0], sizes = [16, 1], strides = [1, 1]} : vector<16x2xf32> to vector<16x1xf32>
    %239 = vector.broadcast %238 : vector<16x1xf32> to vector<16x16xf32>
    %240 = arith.mulf %237, %239 : vector<16x16xf32>
    %241 = vector.extract_strided_slice %215 {offsets = [0, 16], sizes = [16, 16], strides = [1, 1]} : vector<16x32xf32> to vector<16x16xf32>
    %242 = vector.extract_strided_slice %236 {offsets = [0, 1], sizes = [16, 1], strides = [1, 1]} : vector<16x2xf32> to vector<16x1xf32>
    %243 = vector.broadcast %242 : vector<16x1xf32> to vector<16x16xf32>
    %244 = arith.mulf %241, %243 : vector<16x16xf32>
    %cst_92 = arith.constant 0.000000e+00 : f32
    %245 = vector.broadcast %cst_92 : f32 to vector<16x16xf32>
    %246 = arith.addf %245, %240 : vector<16x16xf32>
    %247 = arith.addf %246, %244 : vector<16x16xf32>
    %cst_93 = arith.constant 5.000000e-01 : f32
    %248 = vector.broadcast %cst_93 : f32 to vector<16x16xf32>
    %249 = arith.mulf %247, %248 : vector<16x16xf32>
    %cst_94 = arith.constant dense<0.000000e+00> : vector<8x16xf32>
    %250 = tpu.matmul %20, %249, %cst_94 {dimension_numbers = #tpu.dot_dimension_numbers<[1], [0], [0], [1], [0, 0, 1, 1], [], []>} : vector<8x16xf32>, vector<16x16xf32>, vector<8x16xf32> -> vector<8x16xf32>
    %c408 = arith.constant 408 : index
    %c0_95 = arith.constant 0 : index
    %251 = vector.load %arg5[%c408, %c0_95] : memref<528x128xf32, #tpu.memory_space<vmem>>, vector<1x128xf32>
    %252 = vector.extract_strided_slice %251 {offsets = [0, 0], sizes = [1, 16], strides = [1, 1]} : vector<1x128xf32> to vector<1x16xf32>
    %253 = vector.broadcast %252 : vector<1x16xf32> to vector<8x16xf32>
    %254 = arith.addf %250, %253 : vector<8x16xf32>
    %cst_96 = arith.constant 0.000000e+00 : f32
    %255 = vector.broadcast %cst_96 : f32 to vector<8x16xf32>
    %256 = arith.maximumf %254, %255 : vector<8x16xf32>
    %c416 = arith.constant 416 : index
    %c0_97 = arith.constant 0 : index
    %257 = vector.load %arg5[%c416, %c0_97] : memref<528x128xf32, #tpu.memory_space<vmem>>, vector<16x128xf32>
    %258 = vector.extract_strided_slice %257 {offsets = [0, 0], sizes = [16, 16], strides = [1, 1]} : vector<16x128xf32> to vector<16x16xf32>
    %cst_98 = arith.constant dense<0.000000e+00> : vector<8x16xf32>
    %259 = tpu.matmul %256, %258, %cst_98 {dimension_numbers = #tpu.dot_dimension_numbers<[1], [0], [0], [1], [0, 0, 1, 1], [], []>} : vector<8x16xf32>, vector<16x16xf32>, vector<8x16xf32> -> vector<8x16xf32>
    %c432 = arith.constant 432 : index
    %c0_99 = arith.constant 0 : index
    %260 = vector.load %arg5[%c432, %c0_99] : memref<528x128xf32, #tpu.memory_space<vmem>>, vector<1x128xf32>
    %261 = vector.extract_strided_slice %260 {offsets = [0, 0], sizes = [1, 16], strides = [1, 1]} : vector<1x128xf32> to vector<1x16xf32>
    %262 = vector.broadcast %261 : vector<1x16xf32> to vector<8x16xf32>
    %263 = arith.addf %259, %262 : vector<8x16xf32>
    %cst_100 = arith.constant dense<0.000000e+00> : vector<16x16xf32>
    %264 = tpu.matmul %10, %263, %cst_100 {dimension_numbers = #tpu.dot_dimension_numbers<[1], [0], [0], [1], [0, 0, 1, 1], [], []>} : vector<16x8xf32>, vector<8x16xf32>, vector<16x16xf32> -> vector<16x16xf32>
    %c440 = arith.constant 440 : index
    %c0_101 = arith.constant 0 : index
    %265 = vector.load %arg5[%c440, %c0_101] : memref<528x128xf32, #tpu.memory_space<vmem>>, vector<16x128xf32>
    %266 = vector.extract_strided_slice %265 {offsets = [0, 0], sizes = [16, 16], strides = [1, 1]} : vector<16x128xf32> to vector<16x16xf32>
    %cst_102 = arith.constant dense<0.000000e+00> : vector<8x16xf32>
    %267 = tpu.matmul %197, %266, %cst_102 {dimension_numbers = #tpu.dot_dimension_numbers<[1], [0], [0], [1], [0, 0, 1, 1], [], []>} : vector<8x16xf32>, vector<16x16xf32>, vector<8x16xf32> -> vector<8x16xf32>
    %c456 = arith.constant 456 : index
    %c0_103 = arith.constant 0 : index
    %268 = vector.load %arg5[%c456, %c0_103] : memref<528x128xf32, #tpu.memory_space<vmem>>, vector<1x128xf32>
    %269 = vector.extract_strided_slice %268 {offsets = [0, 0], sizes = [1, 16], strides = [1, 1]} : vector<1x128xf32> to vector<1x16xf32>
    %270 = vector.broadcast %269 : vector<1x16xf32> to vector<8x16xf32>
    %271 = arith.addf %267, %270 : vector<8x16xf32>
    %cst_104 = arith.constant dense<0.000000e+00> : vector<16x16xf32>
    %272 = tpu.matmul %15, %271, %cst_104 {dimension_numbers = #tpu.dot_dimension_numbers<[1], [0], [0], [1], [0, 0, 1, 1], [], []>} : vector<16x8xf32>, vector<8x16xf32>, vector<16x16xf32> -> vector<16x16xf32>
    %c464 = arith.constant 464 : index
    %c0_105 = arith.constant 0 : index
    %273 = vector.load %arg5[%c464, %c0_105] : memref<528x128xf32, #tpu.memory_space<vmem>>, vector<4x128xf32>
    %274 = vector.extract_strided_slice %273 {offsets = [0, 0], sizes = [4, 16], strides = [1, 1]} : vector<4x128xf32> to vector<4x16xf32>
    %cst_106 = arith.constant dense<0.000000e+00> : vector<16x16xf32>
    %275 = tpu.matmul %28, %274, %cst_106 {dimension_numbers = #tpu.dot_dimension_numbers<[1], [0], [0], [1], [0, 0, 1, 1], [], []>} : vector<16x4xf32>, vector<4x16xf32>, vector<16x16xf32> -> vector<16x16xf32>
    %c472 = arith.constant 472 : index
    %c0_107 = arith.constant 0 : index
    %276 = vector.load %arg5[%c472, %c0_107] : memref<528x128xf32, #tpu.memory_space<vmem>>, vector<1x128xf32>
    %277 = vector.extract_strided_slice %276 {offsets = [0, 0], sizes = [1, 16], strides = [1, 1]} : vector<1x128xf32> to vector<1x16xf32>
    %278 = vector.broadcast %277 : vector<1x16xf32> to vector<16x16xf32>
    %279 = arith.addf %275, %278 : vector<16x16xf32>
    %280 = arith.mulf %264, %272 : vector<16x16xf32>
    %cst_108 = arith.constant dense<0.000000e+00> : vector<16xf32>
    %281 = vector.multi_reduction <add>, %280, %cst_108 [1] : vector<16x16xf32> to vector<16xf32>
    %282 = vector.shape_cast %281 : vector<16xf32> to vector<16x1xf32>
    %cst_109 = arith.constant 0.000000e+00 : f32
    %283 = vector.broadcast %cst_109 : f32 to vector<16x1xf32>
    %284 = arith.subf %283, %282 : vector<16x1xf32>
    %285 = math.exp %284 : vector<16x1xf32>
    %cst_110 = arith.constant 1.000000e+00 : f32
    %286 = vector.broadcast %cst_110 : f32 to vector<16x1xf32>
    %287 = arith.addf %286, %285 : vector<16x1xf32>
    %cst_111 = arith.constant 1.000000e+00 : f32
    %288 = vector.broadcast %cst_111 : f32 to vector<16x1xf32>
    %289 = arith.divf %288, %287 : vector<16x1xf32>
    %290 = vector.broadcast %289 : vector<16x1xf32> to vector<16x16xf32>
    %291 = arith.mulf %290, %272 : vector<16x16xf32>
    %cst_112 = arith.constant 1.000000e+00 : f32
    %292 = vector.broadcast %cst_112 : f32 to vector<16x1xf32>
    %293 = arith.subf %292, %289 : vector<16x1xf32>
    %294 = vector.broadcast %293 : vector<16x1xf32> to vector<16x16xf32>
    %295 = arith.mulf %294, %264 : vector<16x16xf32>
    %296 = arith.addf %291, %295 : vector<16x16xf32>
    %297 = arith.addf %296, %279 : vector<16x16xf32>
    %c480 = arith.constant 480 : index
    %c0_113 = arith.constant 0 : index
    %298 = vector.load %arg5[%c480, %c0_113] : memref<528x128xf32, #tpu.memory_space<vmem>>, vector<16x128xf32>
    %299 = vector.extract_strided_slice %298 {offsets = [0, 0], sizes = [16, 16], strides = [1, 1]} : vector<16x128xf32> to vector<16x16xf32>
    %cst_114 = arith.constant dense<0.000000e+00> : vector<16x16xf32>
    %300 = tpu.matmul %297, %299, %cst_114 {dimension_numbers = #tpu.dot_dimension_numbers<[1], [0], [0], [1], [0, 0, 1, 1], [], []>} : vector<16x16xf32>, vector<16x16xf32>, vector<16x16xf32> -> vector<16x16xf32>
    %c496 = arith.constant 496 : index
    %c0_115 = arith.constant 0 : index
    %301 = vector.load %arg5[%c496, %c0_115] : memref<528x128xf32, #tpu.memory_space<vmem>>, vector<1x128xf32>
    %302 = vector.extract_strided_slice %301 {offsets = [0, 0], sizes = [1, 16], strides = [1, 1]} : vector<1x128xf32> to vector<1x16xf32>
    %303 = vector.broadcast %302 : vector<1x16xf32> to vector<16x16xf32>
    %304 = arith.addf %300, %303 : vector<16x16xf32>
    %cst_116 = arith.constant 0.000000e+00 : f32
    %305 = vector.broadcast %cst_116 : f32 to vector<16x16xf32>
    %306 = arith.maximumf %304, %305 : vector<16x16xf32>
    %c504 = arith.constant 504 : index
    %c0_117 = arith.constant 0 : index
    %307 = vector.load %arg5[%c504, %c0_117] : memref<528x128xf32, #tpu.memory_space<vmem>>, vector<16x128xf32>
    %c520 = arith.constant 520 : index
    %c0_118 = arith.constant 0 : index
    %308 = vector.load %arg5[%c520, %c0_118] : memref<528x128xf32, #tpu.memory_space<vmem>>, vector<1x128xf32>
    %cst_119 = arith.constant dense<0.000000e+00> : vector<16x128xf32>
    %309 = tpu.matmul %306, %307, %cst_119 {dimension_numbers = #tpu.dot_dimension_numbers<[1], [0], [0], [1], [0, 0, 1, 1], [], []>} : vector<16x16xf32>, vector<16x128xf32>, vector<16x128xf32> -> vector<16x128xf32>
    %310 = vector.broadcast %308 : vector<1x128xf32> to vector<16x128xf32>
    %311 = arith.addf %309, %310 : vector<16x128xf32>
    %c0_120 = arith.constant 0 : index
    %c0_121 = arith.constant 0 : index
    %312 = vector.load %arg6[%c0_120, %c0_121] : memref<16x128xf32, #tpu.memory_space<vmem>>, vector<16x128xf32>
    tpu.vector_store %arg6[%c0_120, %c0_121], %311 {strides = array<i32>} : memref<16x128xf32, #tpu.memory_space<vmem>>, vector<16x128xf32>,
    return
  }
}

</mosaic_0001>

<bundles_post_ra>
// kernel: forward.1
= control target key start
LH: loop header
LB: loop body
LE: loop exit
PB: predicated region body
PF: predicated region fallthrough
CT: control target
= control target key end

     0   :  { %11 = vsyncpa [#allocation3], 0  ;;  %s4366_s21 = smov [#allocation2]   ;;  %s4778_s0 = inlined_call_operand.vmem [shape: f32[8,8], index: 0, kind: input, shape index: {}]   ;;  %s4779_s1 = inlined_call_operand.vmem [shape: f32[8,6], index: 1, kind: input, shape index: {}]   ;;  %s4780_s2 = inlined_call_operand.vmem [shape: f32[16,4], index: 2, kind: input, shape index: {}]   ;;  %s4781_s3 = inlined_call_operand.vmem [shape: s32[16,2], index: 3, kind: input, shape index: {}]   ;;  %s4782_s4 = inlined_call_operand.vmem [shape: s32[2,16], index: 4, kind: input, shape index: {}]   ;;  %s4783_s5 = inlined_call_operand.hbm [shape: f32[528,128], index: 5, kind: input, shape index: {}]   ;;  %s4784_s6 = inlined_call_operand.vmem [shape: f32[16,128], index: 6, kind: output, shape index: {}]  }
   0x1   :  { %s27_s22 = sshll.u32 %s4366_s21, 4  ;;  %s28_s22 = int_to_ptr.vmem [resolvable:$true] %s27_s22 }
   0x2   :  { %s4352_s23 = scalar_lea.vmem %s28_s22, 8448  ;;  %p4357_p1 = scmp.lt.s32.totalorder %s28_s22, %s28_s22 }
   0x3   :  { %p4353_p0 = scmp.ne.s32.totalorder %s28_s22, %s4352_s23  ;;  %p4358_p2 = scmp.lt.s32.totalorder %s4352_s23, %s4352_s23 }
   0x5   :  { %p4359_p3 = por %p4358_p2, %p4357_p1 }
   0x7   :  { %p4360_p4 = pnand %p4359_p3, %p4353_p0 }
   0x9   :  { %4363 = shalt.err (!%p4360_p4)
}
   0xa   :  { %s4367_s24 = smov 128   ;;  %s4368_s25 = smov 8  }
   0xb   :  { %33 = dma.hbm_to_vmem [thread:$0]  %s4783_s5, 8448, %s28_s22, [#allocation3], %s4367_s24, %s4367_s24, %s4368_s25  }
   0xc   :  { %4364 = dma.done.wait [#allocation3], 8448  }
   0xd   :  { %4365 = vsyncadd [#allocation3], 4294958848  ;;  %v4369_v0 = vmov 0.0   ;;  %vm4370_vm0 = vmmov 0   ;;  %v4371_v1 = vmov 0   ;;  %vm176_vm1 = vcmask 1045504  }
   0xe   :  { %3994 = vmatprep.subr.mxu0 %v4369_v0  ;;  %3999 = vmatprep.subr.mxu1 %v4369_v0  ;;  %vm92_vm2 = vcmask 64512   ;;  %vm172_vm3 = vcmask 48128   ;;  %v86_v2 = vld [vmem:[#allocation2] sm:$0xff]  ;;  %v166_v3 = vld [vmem:[#allocation2 + $0x10] sm:$0x3f]  ;;  %v38_v7 = vld [vmem:[%s4781_s3 + $0x8] sm:$0xff]  ;;  %v40_v12 = vlaneseq }
   0xf   :  { %3996 = vmatprep.mubr.msk.f32.mxu0 %vm4370_vm0, %v4369_v0  ;;  %4001 = vmatprep.mubr.msk.f32.mxu1 %vm4370_vm0, %v4369_v0  ;;  %v4423_v4 = vld [vmem:[%s4778_s0] sm:$0xff]  ;;  %vm258_vm4 = vcmask 1043456   ;;  %vm251_vm5 = vcmask 31744   ;;  %v4449_v10 = vld [vmem:[%s4780_s2 + $0x8] sm:$0xff]  ;;  %v4372_v11 = vmov 1   ;;  %v511_v31 = vld [vmem:[#allocation2 + $0x38] sm:$0xff] }
  0x10   :  { %4289 = vset.pattern.permute.xlu0 %v4371_v1  ;;  %4291 = vset.pattern.permute.xlu1 %v4371_v1  ;;  %v4429_v5 = vld [vmem:[%s4779_s1] sm:$0xff]  ;;  %v41_v13 = vand.u32 127, %v40_v12  ;;  %v3755_v20 = vld [vmem:[#allocation2 + $0x8] ss:$0 sm:$0xff]  ;;  %v3757_v21 = vld [vmem:[#allocation2 + $0x18] ss:$0 sm:$0xff] }
  0x11   :  { %3995 = vmatpush3.msra.mxu0 %v86_v2  ;;  %4000 = vmatpush3.msk.msra.mxu1 %vm176_vm1, %v166_v3  ;;  %v37_v6 = vld [vmem:[%s4781_s3] sm:$0xff]  ;;  %v510_v32 = vld [vmem:[#allocation2 + $0x30] sm:$0xff]  ;;  %v509_v33 = vld [vmem:[#allocation2 + $0x28] sm:$0xff]  ;;  %vm513_vm12 = vcmask 261120   ;;  %vm595_vm13 = vcmask 15360   ;;  %v4498_v63 = vshrl.u32 %v40_v12, 7 }
  0x12   :  { %3997 = vmatmul.mubr.msk.f32.vlgmr.msra.gmra.mxu0 %vm92_vm2, %v4423_v4  ;;  %4002 = vmatmul.mubr.msk.f32.vlgmr.msra.gmra.mxu1 %vm172_vm3, %v4429_v5  ;;  %v250_v8 = vld [vmem:[#allocation2 + $0x20] sm:$0xf]  ;;  %vm611_vm15 = vcmask 130048  }
  0x13   :  { %v4444_v9 = vld [vmem:[%s4780_s2] sm:$0xff]  ;;  %45 = vperm.xlu0 %4289, %v37_v6   ;;  %48 = vperm.xlu1 %4291, %v38_v7   ;;  %v77_v2 = vsub.s32 1, %v4498_v63 }
  0x14   :  { %4004 = vmatprep.subr.msk.mxu0 %vm258_vm4, %v250_v8  ;;  %4006 = vmatprep.mubr.msk.f32.mxu0 %vm251_vm5, %v4444_v9  ;;  %v512_v30 = vld [vmem:[#allocation2 + $0x40] sm:$0xff] }
  0x15   :  { %4005 = vmatpush3.msk.msra.mxu0 %vm258_vm4, %v250_v8  ;;  %v4504_v3 = vld [vmem:[%s4782_s4] sm:$0x3]  ;;  %s4373_s4 = smov 112  }
  0x16   :  { %4007 = vmatmul.mubr.msk.f32.vlgmr.msra.gmra.mxu0 %vm251_vm5, %v4449_v10 }
  0x17   :  { %4290 = vset.pattern.permute.xlu0 %v4372_v11  ;;  %4292 = vset.pattern.permute.xlu1 %v4372_v11 }
  0x18   :  { %57 = vperm.xlu0 %4290, %v37_v6   ;;  %60 = vperm.xlu1 %4292, %v38_v7   ;;  %v78_v6 = vrot.slane %v4504_v3, %v77_v2 }
  0x1a   :  { %vm79_vm14 = vcmp.eq.s32.totalorder %v4498_v63, %v78_v6 }
  0x1b   :  { %v4509_v8 = vsel %vm79_vm14, 1.0, %v4369_v0 }
  0x1c   :  { %4293 = vset.pattern.permute.xlu1 %v4371_v1 }
  0x8e   :  { %v46_v14 = vpop.permute.xlu0 %45  ;;  %v49_v18 = vpop.permute.xlu1 %48 }
  0x8f   :  { %vm50_vm6 = vcmp.eq.s32.totalorder %v41_v13, %v46_v14  ;;  %vm51_vm9 = vcmp.eq.s32.totalorder %v41_v13, %v49_v18  ;;  %v866_v14 = vld [vmem:[#allocation2 + $0x50] sm:$0x3f] }
  0x90   :  { %v4462_v15 = vsel %vm50_vm6, 1.0, %v4369_v0  ;;  %v4475_v29 = vsel %vm51_vm9, 1.0, %v4369_v0  ;;  %v1021_v18 = vld [vmem:[#allocation2 + $0x70] sm:$0xf] }
  0x91   :  { %4011 = vmatprep.mubr.msk.f32.mxu1 %vm92_vm2, %v4462_v15 }
  0x93   :  { %v58_v16 = vpop.permute.xlu0 %57  ;;  %v61_v19 = vpop.permute.xlu1 %60 }
  0x94   :  { %vm62_vm7 = vcmp.eq.s32.totalorder %v41_v13, %v58_v16  ;;  %vm63_vm8 = vcmp.eq.s32.totalorder %v41_v13, %v61_v19 }
  0x95   :  { %v4467_v17 = vsel %vm62_vm7, 1.0, %v4369_v0  ;;  %v4472_v28 = vsel %vm63_vm8, 1.0, %v4369_v0 }
  0x96   :  { %4016 = vmatprep.mubr.msk.f32.mxu0 %vm92_vm2, %v4467_v17 }
  0xd2   :  { %v162_v22 = vpop.f32.mrf.mxu0  ;;  %v246_v23 = vpop.f32.mrf.mxu1 }
  0xd3   :  { %v163_v24 = vadd.f32 %v3755_v20, %v162_v22  ;;  %v247_v25 = vadd.f32 %v3757_v21, %v246_v23 }
  0xd4   :  { %v3998_v26 = vpop.f32.mrf.mxu0  ;;  %v4003_v27 = vpop.f32.mrf.mxu1 }
  0xd5   :  { %4009 = vmatprep.subr.mxu1 %v163_v24  ;;  %4014 = vmatprep.subr.mxu0 %v247_v25 }
  0xd6   :  { %4010 = vmatpush3.msra.mxu1 %v163_v24  ;;  %4015 = vmatpush3.msra.mxu0 %v247_v25  ;;  %v4008_v34 = vpop.f32.mrf.mxu0 }
  0xd7   :  { %4012 = vmatmul.mubr.msk.f32.vlgmr.msra.gmra.mxu1 %vm92_vm2, %v4475_v29  ;;  %4017 = vmatmul.mubr.msk.f32.vlgmr.msra.gmra.mxu0 %vm92_vm2, %v4472_v28 }
  0xd8   :  { %4030 = vmatprep.subr.mxu0 %v4369_v0  ;;  %4034 = vmatprep.mubr.msk.f32.mxu0 %vm4370_vm0, %v4369_v0  ;;  %v328_v35 = vpop.f32.mrf.mxu0 }
  0xd9   :  { %4019 = vmatprep.subr.mxu1 %v512_v30 }
  0xda   :  { %4020 = vmatpush3.msra.mxu1 %v512_v30 }
  0xdb   :  { %4021 = vmatprep.subr.mxu1 %v511_v31 }
  0xdc   :  { %4022 = vmatpush3.msra.mxu1 %v511_v31 }
  0xdd   :  { %4023 = vmatprep.subr.mxu1 %v510_v32 }
  0xde   :  { %4024 = vmatpush3.msra.mxu1 %v510_v32 }
  0xdf   :  { %4025 = vmatprep.subr.mxu1 %v509_v33 }
  0xe0   :  { %4026 = vmatpush3.msra.mxu1 %v509_v33 }
  0xe1   :  { %4042 = vmatprep.subr.mxu1 %v4369_v0 }
 0x197   :  { %v4485_v36 = vpop.f32.mrf.mxu1  ;;  %v4018_v37 = vpop.f32.mrf.mxu0 }
 0x198   :  { %v500_v38 = vadd.f32 %v4018_v37, %v4485_v36 }
 0x199   :  { %v4488_v39 = vpop.f32.mrf.mxu1  ;;  %v490_v40 = vpop.f32.mrf.mxu0 }
 0x19a   :  { %v502_v41 = vadd.f32 %v4008_v34, %v500_v38  ;;  %v499_v42 = vadd.f32 %v490_v40, %v4488_v39  ;;  %v3774_v38 = vld [vmem:[#allocation2 + $0x58] ss:$0 sm:$0xff] }
 0x19c   :  { %v501_v43 = vadd.f32 %v499_v42, %v328_v35  ;;  %v506_v44 = vmul.f32 0.2, %v502_v41  ;;  %vm504_vm10 = vcmp.gt.f32.partialorder %v502_v41, 0.0 }
 0x19e   :  { %v505_v45 = vmul.f32 0.2, %v501_v43  ;;  %vm503_vm11 = vcmp.gt.f32.partialorder %v501_v43, 0.0  ;;  %v508_v47 = vsel %vm504_vm10, %v502_v41, %v506_v44  ;;  %v945_v44 = vld [vmem:[#allocation2 + $0x60] sm:$0xff] }
 0x1a0   :  { %v507_v46 = vsel %vm503_vm11, %v501_v43, %v505_v45  ;;  %v3777_v45 = vld [vmem:[#allocation2 + $0x68] ss:$0 sm:$0xff] }
 0x1a1   :  { %4027 = vmatprep.mubr.msk.f32.mxu1 %vm513_vm12, %v507_v46 }
 0x1a2   :  { %4028 = vmatmul.mubr.msk.f32.vlgmr.msra.gmra.mxu1 %vm513_vm12, %v508_v47 }
 0x1a3   :  { %4046 = vmatprep.mubr.msk.f32.mxu1 %vm4370_vm0, %v4369_v0 }
 0x262   :  { %v4029_v48 = vpop.f32.mrf.mxu1 }
 0x263   :  { %v597_v50 = vsel %vm595_vm13, %v4029_v48, -inf }
 0x264   :  { %v586_v49 = vpop.f32.mrf.mxu1 }
 0x265   :  { %v596_v51 = vsel %vm595_vm13, %v586_v49, -inf }
 0x266   :  { %v598_v52 = vmax.f32 %v596_v51, %v597_v50  ;;  %v1261_v50 = vld [vmem:[#allocation2 + $0x80] sm:$0xff]  ;;  %v1260_v51 = vld [vmem:[#allocation2 + $0x78] sm:$0xff] }
 0x268   :  { %v599_v53 = vrot.slane %v598_v52, 4 }
 0x26a   :  { %v600_v54 = vmax.f32 %v598_v52, %v599_v53 }
 0x26c   :  { %v601_v55 = vrot.slane %v600_v54, 2 }
 0x26e   :  { %v602_v56 = vmax.f32 %v600_v54, %v601_v55 }
 0x270   :  { %v603_v57 = vrot.slane %v602_v56, 1 }
 0x272   :  { %v604_v58 = vmax.f32 %v602_v56, %v603_v57 }
 0x274   :  { %v605_v59 = vsub.f32 %v586_v49, %v604_v58  ;;  %v606_v60 = vsub.f32 %v4029_v48, %v604_v58  ;;  %v1262_v49 = vld [vmem:[#allocation2 + $0x88] sm:$0xff] }
 0x276   :  { %v609_v61 = vmul.f32 1.442695, %v606_v60  ;;  %v607_v62 = vmul.f32 1.442695, %v605_v59 }
 0x278   :  { %4302 = vpow2.f32 %v609_v61 }
 0x279   :  { %4304 = vpow2.f32 %v607_v62 }
 0x285   :  { %v4303_v7 = vpop.eup %4302 }
 0x286   :  { %4031 = vmatpush3.msra.mxu0 %v4303_v7  ;;  %v4305_v12 = vpop.eup %4304 }
 0x287   :  { %4032 = vmatprep.subr.mxu0 %v4369_v0 }
 0x288   :  { %4033 = vmatpush3.msra.mxu0 %v4305_v12 }
 0x289   :  { %4035 = vmatmul.mubr.msk.f32.vlgmr.msra.gmra.mxu0 %vm611_vm15, %v4509_v8 }
 0x28a   :  { %4039 = vmatprep.mubr.msk.f32.mxu0 %vm92_vm2, %v4467_v17 }
 0x349   :  { %v681_v13 = vpop.f32.mrf.mxu0 }
 0x34a   :  { %4037 = vmatprep.subr.mxu0 %v681_v13 }
 0x34b   :  { %v4036_v16 = vpop.f32.mrf.mxu0  ;;  %4038 = vmatpush3.msra.mxu0 %v681_v13 }
 0x34c   :  { %4040 = vmatmul.mubr.msk.f32.vlgmr.msra.gmra.mxu0 %vm92_vm2, %v4472_v28  ;;  %4049 = vmatprep.subr.mxu0 %v4369_v0 }
 0x34d   :  { %4050 = vmatpush3.msk.msra.mxu0 %vm176_vm1, %v866_v14  ;;  %4051 = vmatprep.mubr.msk.f32.mxu0 %vm4370_vm0, %v4369_v0 }
 0x34e   :  { %4059 = vmatprep.subr.msk.mxu0 %vm258_vm4, %v1021_v18 }
 0x350   :  { %4052 = vmatmul.mubr.msk.f32.vlgmr.msra.gmra.mxu0 %vm172_vm3, %v4429_v5 }
 0x351   :  { %4060 = vmatpush3.msk.msra.mxu0 %vm258_vm4, %v1021_v18  ;;  %4061 = vmatprep.mubr.msk.f32.mxu0 %vm251_vm5, %v4444_v9 }
 0x354   :  { %4062 = vmatmul.mubr.msk.f32.vlgmr.msra.gmra.mxu0 %vm251_vm5, %v4449_v10 }
 0x355   :  { %4071 = vmatprep.mubr.msk.f32.mxu0 %vm92_vm2, %v4462_v15 }
 0x40c   :  { %v4041_v19 = vpop.f32.mrf.mxu0 }
 0x40d   :  { %v761_v20 = vmax.f32 %v4041_v19, 1e-20 }
 0x40e   :  { %v751_v21 = vpop.f32.mrf.mxu0 }
 0x40f   :  { %4306 = vrcp.f32 %v761_v20  ;;  %v760_v22 = vmax.f32 %v751_v21, 1e-20 }
 0x410   :  { %v941_v26 = vpop.f32.mrf.mxu0 }
 0x411   :  { %4308 = vrcp.f32 %v760_v22  ;;  %v942_v43 = vadd.f32 %v3774_v38, %v941_v26 }
 0x412   :  { %v4053_v27 = vpop.f32.mrf.mxu0 }
 0x414   :  { %v4063_v52 = vpop.f32.mrf.mxu0 }
 0x416   :  { %v1091_v54 = vpop.f32.mrf.mxu0 }
 0x41c   :  { %v4307_v23 = vpop.eup %4306 }
 0x41d   :  { %v765_v24 = vmul.f32 %v4307_v23, %v4303_v7 }
 0x41e   :  { %v4309_v5 = vpop.eup %4308 }
 0x41f   :  { %783 = vperm.xlu0 %4290, %v765_v24   ;;  %773 = vperm.xlu1 %4293, %v765_v24   ;;  %v763_v25 = vmul.f32 %v4309_v5, %v4305_v12 }
 0x423   :  { %779 = vperm.xlu0 %4290, %v763_v25   ;;  %768 = vperm.xlu1 %4293, %v763_v25  }
 0x49a   :  { %v784_v30 = vpop.permute.xlu0 %783  ;;  %v774_v31 = vpop.permute.xlu1 %773 }
 0x49b   :  { %v787_v32 = vmul.f32 %v4485_v36, %v784_v30  ;;  %v777_v33 = vmul.f32 %v4485_v36, %v774_v31  ;;  %v70_v30 = vsub.s32 0, %v4498_v63 }
 0x49d   :  { %v789_v34 = vsel %vm611_vm15, %v777_v33, %v787_v32  ;;  %v71_v31 = vrot.slane %v4504_v3, %v70_v30 }
 0x49e   :  { %4043 = vmatpush3.msra.mxu1 %v789_v34  ;;  %v780_v35 = vpop.permute.xlu0 %779  ;;  %v769_v37 = vpop.permute.xlu1 %768 }
 0x49f   :  { %v786_v40 = vmul.f32 %v780_v35, %v4488_v39  ;;  %v776_v41 = vmul.f32 %v769_v37, %v4488_v39  ;;  %4044 = vmatprep.subr.mxu1 %v4369_v0  ;;  %vm72_vm6 = vcmp.eq.s32.totalorder %v4498_v63, %v71_v31 }
 0x4a0   :  { %v4574_v33 = vsel %vm72_vm6, 1.0, %v4369_v0 }
 0x4a1   :  { %v788_v42 = vsel %vm611_vm15, %v776_v41, %v786_v40 }
 0x4a2   :  { %4045 = vmatpush3.msra.mxu1 %v788_v42 }
 0x4a3   :  { %4047 = vmatmul.mubr.msk.f32.vlgmr.msra.gmra.mxu1 %vm611_vm15, %v4509_v8  ;;  %4054 = vmatprep.subr.mxu1 %v4369_v0 }
 0x4a4   :  { %4055 = vmatpush3.msra.mxu1 %v945_v44  ;;  %4056 = vmatprep.mubr.msk.f32.mxu1 %vm4370_vm0, %v4369_v0 }
 0x4a5   :  { %4064 = vmatprep.subr.mxu1 %v942_v43 }
 0x4a7   :  { %4057 = vmatmul.mubr.msk.f32.vlgmr.msra.gmra.mxu1 %vm92_vm2, %v4423_v4  ;;  %v1263_v4 = vld [vmem:[#allocation2 + $0x90] sm:$0xff] }
 0x4a8   :  { %4066 = vmatprep.mubr.msk.f32.mxu1 %vm92_vm2, %v4467_v17  ;;  %4065 = vmatpush3.msra.mxu1 %v942_v43 }
 0x4a9   :  { %4074 = vmatprep.subr.mxu1 %v1263_v4 }
 0x4ab   :  { %4067 = vmatmul.mubr.msk.f32.vlgmr.msra.gmra.mxu1 %vm92_vm2, %v4472_v28 }
 0x4ac   :  { %4075 = vmatpush3.msra.mxu1 %v1263_v4 }
 0x4ad   :  { %4076 = vmatprep.subr.mxu1 %v1262_v49 }
 0x4ae   :  { %4077 = vmatpush3.msra.mxu1 %v1262_v49 }
 0x4af   :  { %4078 = vmatprep.subr.mxu1 %v1261_v50 }
 0x4b0   :  { %4079 = vmatpush3.msra.mxu1 %v1261_v50 }
 0x4b1   :  { %4080 = vmatprep.subr.mxu1 %v1260_v51 }
 0x4b2   :  { %4081 = vmatpush3.msra.mxu1 %v1260_v51 }
 0x4b3   :  { %4097 = vmatprep.subr.mxu1 %v4369_v0 }
 0x563   :  { %v4550_v36 = vpop.f32.mrf.mxu1 }
 0x565   :  { %v4048_v39 = vpop.f32.mrf.mxu1 }
 0x566   :  { %v1617_v39 = vld [vmem:[#allocation2 + $0xb8] sm:$0xff] }
 0x567   :  { %v1017_v46 = vpop.f32.mrf.mxu1 }
 0x568   :  { %v1018_v47 = vadd.f32 %v3777_v45, %v1017_v46 }
 0x569   :  { %v4058_v48 = vpop.f32.mrf.mxu1 }
 0x56a   :  { %4069 = vmatprep.subr.mxu0 %v1018_v47 }
 0x56b   :  { %4070 = vmatpush3.msra.mxu0 %v1018_v47  ;;  %v4558_v53 = vpop.f32.mrf.mxu1 }
 0x56c   :  { %4072 = vmatmul.mubr.msk.f32.vlgmr.msra.gmra.mxu0 %vm92_vm2, %v4475_v29  ;;  %4085 = vmatprep.subr.mxu0 %v4369_v0 }
 0x56d   :  { %4089 = vmatprep.mubr.msk.f32.mxu0 %vm4370_vm0, %v4369_v0  ;;  %v4561_v57 = vpop.f32.mrf.mxu1 }
 0x62c   :  { %v4073_v55 = vpop.f32.mrf.mxu0 }
 0x62d   :  { %v1251_v56 = vadd.f32 %v4073_v55, %v4558_v53  ;;  %v1699_v55 = vld [vmem:[#allocation2 + $0xe0] sm:$0xff] }
 0x62e   :  { %v1241_v58 = vpop.f32.mrf.mxu0 }
 0x62f   :  { %v1253_v59 = vadd.f32 %v4063_v52, %v1251_v56  ;;  %v1250_v60 = vadd.f32 %v1241_v58, %v4561_v57  ;;  %v3772_v56 = vld [vmem:[#allocation2 + $0x48] ss:$0 sm:$0xff] }
 0x630   :  { %v4601_v58 = vadd.f32 %v3772_v56, %v4550_v36  ;;  %v1616_v36 = vld [vmem:[#allocation2 + $0xb0] sm:$0xff] }
 0x631   :  { %v1252_v61 = vadd.f32 %v1250_v60, %v1091_v54  ;;  %v1257_v62 = vmul.f32 0.2, %v1253_v59  ;;  %vm1255_vm1 = vcmp.gt.f32.partialorder %v1253_v59, 0.0 }
 0x632   :  { %v865_v60 = vmax.f32 %v4601_v58, 0.0 }
 0x633   :  { %v1256_v2 = vmul.f32 0.2, %v1252_v61  ;;  %vm1254_vm3 = vcmp.gt.f32.partialorder %v1252_v61, 0.0  ;;  %v1259_v7 = vsel %vm1255_vm1, %v1253_v59, %v1257_v62  ;;  %v1696_v59 = vld [vmem:[#allocation2 + $0xc8] sm:$0xff]  ;;  %v1614_v62 = vld [vmem:[#allocation2 + $0xa0] sm:$0xff] }
 0x635   :  { %v1258_v6 = vsel %vm1254_vm3, %v1252_v61, %v1256_v2  ;;  %v1615_v61 = vld [vmem:[#allocation2 + $0xa8] sm:$0xff]  ;;  %v1778_v2 = vld [vmem:[#allocation2 + $0xf0] sm:$0xf] }
 0x636   :  { %4082 = vmatprep.mubr.msk.f32.mxu1 %vm513_vm12, %v1258_v6  ;;  %v3791_v6 = vld [vmem:[#allocation2 + $0x98] ss:$0 sm:$0xff] }
 0x637   :  { %4083 = vmatmul.mubr.msk.f32.vlgmr.msra.gmra.mxu1 %vm513_vm12, %v1259_v7 }
 0x638   :  { %4101 = vmatprep.mubr.msk.f32.mxu1 %vm4370_vm0, %v4369_v0 }
 0x6f7   :  { %v4084_v12 = vpop.f32.mrf.mxu1 }
 0x6f8   :  { %v1346_v14 = vsel %vm595_vm13, %v4084_v12, -inf }
 0x6f9   :  { %v1336_v13 = vpop.f32.mrf.mxu1 }
 0x6fa   :  { %v1345_v16 = vsel %vm595_vm13, %v1336_v13, -inf }
 0x6fb   :  { %v1347_v18 = vmax.f32 %v1345_v16, %v1346_v14  ;;  %v3795_v16 = vld [vmem:[#allocation2 + $0xe8] ss:$0 sm:$0xff] }
 0x6fd   :  { %v1348_v19 = vrot.slane %v1347_v18, 4 }
 0x6ff   :  { %v1349_v20 = vmax.f32 %v1347_v18, %v1348_v19 }
 0x701   :  { %v1350_v21 = vrot.slane %v1349_v20, 2 }
 0x703   :  { %v1351_v22 = vmax.f32 %v1349_v20, %v1350_v21  ;;  %v3793_v21 = vld [vmem:[#allocation2 + $0xc0] ss:$0 sm:$0xff] }
 0x705   :  { %v1352_v23 = vrot.slane %v1351_v22, 1 }
 0x707   :  { %v1353_v24 = vmax.f32 %v1351_v22, %v1352_v23 }
 0x709   :  { %v1354_v5 = vsub.f32 %v1336_v13, %v1353_v24  ;;  %v1355_v25 = vsub.f32 %v4084_v12, %v1353_v24 }
 0x70b   :  { %v1358_v26 = vmul.f32 1.442695, %v1355_v25  ;;  %v1356_v27 = vmul.f32 1.442695, %v1354_v5  ;;  %v2020_v5 = vld [vmem:[#allocation2 + $0x110] sm:$0xff]  ;;  %v2019_v25 = vld [vmem:[#allocation2 + $0x108] sm:$0xff] }
 0x70d   :  { %4310 = vpow2.f32 %v1358_v26  ;;  %v2018_v26 = vld [vmem:[#allocation2 + $0x100] sm:$0xff] }
 0x70e   :  { %4312 = vpow2.f32 %v1356_v27  ;;  %v2017_v27 = vld [vmem:[#allocation2 + $0xf8] sm:$0xff] }
 0x71a   :  { %v4311_v32 = vpop.eup %4310 }
 0x71b   :  { %4086 = vmatpush3.msra.mxu0 %v4311_v32  ;;  %v4313_v34 = vpop.eup %4312 }
 0x71c   :  { %4087 = vmatprep.subr.mxu0 %v4369_v0 }
 0x71d   :  { %4088 = vmatpush3.msra.mxu0 %v4313_v34 }
 0x71e   :  { %4090 = vmatmul.mubr.msk.f32.vlgmr.msra.gmra.mxu0 %vm611_vm15, %v4574_v33 }
 0x71f   :  { %4094 = vmatprep.mubr.msk.f32.mxu0 %vm92_vm2, %v4462_v15 }
 0x7de   :  { %v1429_v35 = vpop.f32.mrf.mxu0 }
 0x7df   :  { %4092 = vmatprep.subr.mxu0 %v1429_v35 }
 0x7e0   :  { %v4091_v3 = vpop.f32.mrf.mxu0  ;;  %4093 = vmatpush3.msra.mxu0 %v1429_v35 }
 0x7e1   :  { %4095 = vmatmul.mubr.msk.f32.vlgmr.msra.gmra.mxu0 %vm92_vm2, %v4475_v29  ;;  %4104 = vmatprep.subr.mxu0 %v4369_v0 }
 0x7e2   :  { %4112 = vmatprep.mubr.msk.f32.mxu0 %vm4370_vm0, %v4369_v0  ;;  %4105 = vmatpush3.msra.mxu0 %v1617_v39 }
 0x7e3   :  { %4106 = vmatprep.subr.mxu0 %v4369_v0 }
 0x7e4   :  { %4107 = vmatpush3.msra.mxu0 %v1616_v36 }
 0x7e5   :  { %4108 = vmatprep.subr.mxu0 %v4369_v0 }
 0x7e6   :  { %4109 = vmatpush3.msra.mxu0 %v1615_v61 }
 0x7e7   :  { %4110 = vmatprep.subr.mxu0 %v4369_v0 }
 0x7e8   :  { %4111 = vmatpush3.msra.mxu0 %v1614_v62  ;;  %v2383_v62 = vld [vmem:[#allocation2 + $0x138] sm:$0xff] }
 0x7e9   :  { %4126 = vmatprep.subr.msk.mxu0 %vm258_vm4, %v1778_v2 }
 0x8a1   :  { %v4096_v63 = vpop.f32.mrf.mxu0 }
 0x8a2   :  { %v1509_v37 = vmax.f32 %v4096_v63, 1e-20 }
 0x8a3   :  { %v1499_v38 = vpop.f32.mrf.mxu0 }
 0x8a4   :  { %4314 = vrcp.f32 %v1509_v37  ;;  %v1508_v40 = vmax.f32 %v1499_v38, 1e-20 }
 0x8a6   :  { %4316 = vrcp.f32 %v1508_v40 }
 0x8b1   :  { %v4315_v41 = vpop.eup %4314 }
 0x8b2   :  { %v1513_v42 = vmul.f32 %v4315_v41, %v4311_v32 }
 0x8b3   :  { %v4317_v43 = vpop.eup %4316 }
 0x8b4   :  { %1531 = vperm.xlu0 %4290, %v1513_v42   ;;  %1521 = vperm.xlu1 %4293, %v1513_v42   ;;  %v1511_v44 = vmul.f32 %v4317_v43, %v4313_v34 }
 0x8b8   :  { %1527 = vperm.xlu0 %4290, %v1511_v44   ;;  %1516 = vperm.xlu1 %4293, %v1511_v44  }
 0x8bc   :  { %4294 = vset.pattern.permute.xlu1 %v4372_v11 }
 0x92f   :  { %v1532_v45 = vpop.permute.xlu0 %1531  ;;  %v1522_v46 = vpop.permute.xlu1 %1521 }
 0x930   :  { %v1535_v47 = vmul.f32 %v4558_v53, %v1532_v45  ;;  %v1525_v48 = vmul.f32 %v4558_v53, %v1522_v46  ;;  %v1698_v53 = vld [vmem:[#allocation2 + $0xd8] sm:$0xff] }
 0x932   :  { %v1537_v4 = vsel %vm611_vm15, %v1525_v48, %v1535_v47 }
 0x933   :  { %4098 = vmatpush3.msra.mxu1 %v1537_v4  ;;  %v1528_v49 = vpop.permute.xlu0 %1527  ;;  %v1517_v50 = vpop.permute.xlu1 %1516 }
 0x934   :  { %v1534_v51 = vmul.f32 %v1528_v49, %v4561_v57  ;;  %v1524_v52 = vmul.f32 %v1517_v50, %v4561_v57  ;;  %4099 = vmatprep.subr.mxu1 %v4369_v0  ;;  %v1697_v57 = vld [vmem:[#allocation2 + $0xd0] sm:$0xff] }
 0x936   :  { %v1536_v54 = vsel %vm611_vm15, %v1524_v52, %v1534_v51 }
 0x937   :  { %4100 = vmatpush3.msra.mxu1 %v1536_v54 }
 0x938   :  { %4102 = vmatmul.mubr.msk.f32.vlgmr.msra.gmra.mxu1 %vm611_vm15, %v4574_v33  ;;  %4115 = vmatprep.subr.mxu1 %v4369_v0 }
 0x939   :  { %4116 = vmatpush3.msra.mxu1 %v1699_v55  ;;  %4123 = vmatprep.mubr.msk.f32.mxu1 %vm4370_vm0, %v4369_v0 }
 0x93a   :  { %4117 = vmatprep.subr.mxu1 %v4369_v0 }
 0x93b   :  { %4118 = vmatpush3.msra.mxu1 %v1698_v53 }
 0x93c   :  { %4119 = vmatprep.subr.mxu1 %v4369_v0 }
 0x93d   :  { %4120 = vmatpush3.msra.mxu1 %v1697_v57 }
 0x93e   :  { %4121 = vmatprep.subr.mxu1 %v4369_v0 }
 0x93f   :  { %4122 = vmatpush3.msra.mxu1 %v1696_v59 }
 0x940   :  { %4124 = vmatmul.mubr.msk.f32.vlgmr.msra.gmra.mxu1 %vm513_vm12, %v865_v60 }
 0x941   :  { %4133 = vmatprep.mubr.msk.f32.mxu1 %vm92_vm2, %v4462_v15 }
 0x9f8   :  { %v1609_v7 = vpop.f32.mrf.mxu1 }
 0x9f9   :  { %v4615_v12 = vadd.f32 %v3791_v6, %v1609_v7  ;;  %v2382_v6 = vld [vmem:[#allocation2 + $0x130] sm:$0xff]  ;;  %v2381_v7 = vld [vmem:[#allocation2 + $0x128] sm:$0xff] }
 0x9fa   :  { %v4103_v13 = vpop.f32.mrf.mxu1 }
 0x9fb   :  { %v1613_v14 = vmax.f32 %v4615_v12, 0.0  ;;  %v2380_v13 = vld [vmem:[#allocation2 + $0x120] sm:$0xff]  ;;  %v2780_v12 = vld [vmem:[#allocation2 + $0x190] sm:$0xff] }
 0x9fd   :  { %4113 = vmatmul.mubr.msk.f32.vlgmr.msra.gmra.mxu0 %vm513_vm12, %v1613_v14 }
 0x9fe   :  { %4127 = vmatpush3.msk.msra.mxu0 %vm258_vm4, %v1778_v2  ;;  %4128 = vmatprep.mubr.msk.f32.mxu0 %vm251_vm5, %v4444_v9 }
 0xa00   :  { %v1774_v18 = vpop.f32.mrf.mxu1 }
 0xa01   :  { %v1775_v19 = vadd.f32 %v3795_v16, %v1774_v18  ;;  %4129 = vmatmul.mubr.msk.f32.vlgmr.msra.gmra.mxu0 %vm251_vm5, %v4449_v10  ;;  %v2538_v16 = vld [vmem:[#allocation2 + $0x170] sm:$0xf] }
 0xa02   :  { %v4125_v20 = vpop.f32.mrf.mxu1  ;;  %4138 = vmatprep.mubr.msk.f32.mxu0 %vm92_vm2, %v4467_v17 }
 0xa03   :  { %4136 = vmatprep.subr.mxu0 %v1775_v19 }
 0xa04   :  { %4137 = vmatpush3.msra.mxu0 %v1775_v19 }
 0xa05   :  { %4139 = vmatmul.mubr.msk.f32.vlgmr.msra.gmra.mxu0 %vm92_vm2, %v4472_v28  ;;  %4152 = vmatprep.subr.mxu0 %v4369_v0 }
 0xa06   :  { %4156 = vmatprep.mubr.msk.f32.mxu0 %vm4370_vm0, %v4369_v0 }
 0xabd   :  { %v1692_v22 = vpop.f32.mrf.mxu0 }
 0xabe   :  { %v1693_v23 = vadd.f32 %v3793_v21, %v1692_v22 }
 0xabf   :  { %v4114_v24 = vpop.f32.mrf.mxu0 }
 0xac0   :  { %4131 = vmatprep.subr.mxu1 %v1693_v23 }
 0xac1   :  { %4132 = vmatpush3.msra.mxu1 %v1693_v23  ;;  %v4130_v30 = vpop.f32.mrf.mxu0 }
 0xac2   :  { %4134 = vmatmul.mubr.msk.f32.vlgmr.msra.gmra.mxu1 %vm92_vm2, %v4475_v29  ;;  %4141 = vmatprep.subr.mxu1 %v2020_v5 }
 0xac3   :  { %4142 = vmatpush3.msra.mxu1 %v2020_v5  ;;  %v1848_v31 = vpop.f32.mrf.mxu0 }
 0xac4   :  { %4143 = vmatprep.subr.mxu1 %v2019_v25 }
 0xac5   :  { %4144 = vmatpush3.msra.mxu1 %v2019_v25  ;;  %v4140_v32 = vpop.f32.mrf.mxu0 }
 0xac6   :  { %4145 = vmatprep.subr.mxu1 %v2018_v26 }
 0xac7   :  { %4146 = vmatpush3.msra.mxu1 %v2018_v26  ;;  %v1998_v3 = vpop.f32.mrf.mxu0 }
 0xac8   :  { %4147 = vmatprep.subr.mxu1 %v2017_v27 }
 0xac9   :  { %4148 = vmatpush3.msra.mxu1 %v2017_v27 }
 0xaca   :  { %4164 = vmatprep.subr.mxu1 %v4369_v0 }
 0xb82   :  { %v4636_v34 = vpop.f32.mrf.mxu1 }
 0xb83   :  { %v2008_v35 = vadd.f32 %v4140_v32, %v4636_v34 }
 0xb84   :  { %v4639_v63 = vpop.f32.mrf.mxu1 }
 0xb85   :  { %v2010_v37 = vadd.f32 %v4130_v30, %v2008_v35  ;;  %v2007_v38 = vadd.f32 %v1998_v3, %v4639_v63 }
 0xb87   :  { %v2009_v40 = vadd.f32 %v2007_v38, %v1848_v31  ;;  %v2014_v41 = vmul.f32 0.2, %v2010_v37  ;;  %vm2012_vm8 = vcmp.gt.f32.partialorder %v2010_v37, 0.0 }
 0xb89   :  { %vm2011_vm7 = vcmp.gt.f32.partialorder %v2009_v40, 0.0  ;;  %v2013_v42 = vmul.f32 0.2, %v2009_v40  ;;  %v2016_v44 = vsel %vm2012_vm8, %v2010_v37, %v2014_v41 }
 0xb8b   :  { %v2015_v43 = vsel %vm2011_vm7, %v2009_v40, %v2013_v42  ;;  %v2462_v42 = vld [vmem:[#allocation2 + $0x160] sm:$0xff] }
 0xb8c   :  { %4149 = vmatprep.mubr.msk.f32.mxu1 %vm513_vm12, %v2015_v43  ;;  %v3811_v43 = vld [vmem:[#allocation2 + $0x140] ss:$0 sm:$0xff] }
 0xb8d   :  { %4150 = vmatmul.mubr.msk.f32.vlgmr.msra.gmra.mxu1 %vm513_vm12, %v2016_v44  ;;  %v2459_v44 = vld [vmem:[#allocation2 + $0x148] sm:$0xff] }
 0xb8e   :  { %4168 = vmatprep.mubr.msk.f32.mxu1 %vm4370_vm0, %v4369_v0 }
 0xc4d   :  { %v4151_v39 = vpop.f32.mrf.mxu1 }
 0xc4e   :  { %v2103_v46 = vsel %vm595_vm13, %v4151_v39, -inf }
 0xc4f   :  { %v2093_v45 = vpop.f32.mrf.mxu1 }
 0xc50   :  { %v2102_v47 = vsel %vm595_vm13, %v2093_v45, -inf }
 0xc51   :  { %v2104_v48 = vmax.f32 %v2102_v47, %v2103_v46  ;;  %v3813_v46 = vld [vmem:[#allocation2 + $0x168] ss:$0 sm:$0xff] }
 0xc53   :  { %v2105_v4 = vrot.slane %v2104_v48, 4 }
 0xc55   :  { %v2106_v49 = vmax.f32 %v2104_v48, %v2105_v4 }
 0xc57   :  { %v2107_v50 = vrot.slane %v2106_v49, 2 }
 0xc59   :  { %v2108_v51 = vmax.f32 %v2106_v49, %v2107_v50  ;;  %v2778_v49 = vld [vmem:[#allocation2 + $0x180] sm:$0xff]  ;;  %v2777_v50 = vld [vmem:[#allocation2 + $0x178] sm:$0xff] }
 0xc5b   :  { %v2109_v52 = vrot.slane %v2108_v51, 1 }
 0xc5d   :  { %v2110_v54 = vmax.f32 %v2108_v51, %v2109_v52 }
 0xc5f   :  { %v2111_v55 = vsub.f32 %v2093_v45, %v2110_v54  ;;  %v2112_v56 = vsub.f32 %v4151_v39, %v2110_v54 }
 0xc61   :  { %v2115_v53 = vmul.f32 1.442695, %v2112_v56  ;;  %v2113_v57 = vmul.f32 1.442695, %v2111_v55 }
 0xc63   :  { %4318 = vpow2.f32 %v2115_v53 }
 0xc64   :  { %4320 = vpow2.f32 %v2113_v57 }
 0xc70   :  { %v4319_v59 = vpop.eup %4318 }
 0xc71   :  { %4153 = vmatpush3.msra.mxu0 %v4319_v59  ;;  %v4321_v36 = vpop.eup %4320 }
 0xc72   :  { %4154 = vmatprep.subr.mxu0 %v4369_v0 }
 0xc73   :  { %4155 = vmatpush3.msra.mxu0 %v4321_v36 }
 0xc74   :  { %4157 = vmatmul.mubr.msk.f32.vlgmr.msra.gmra.mxu0 %vm611_vm15, %v4509_v8 }
 0xc75   :  { %4161 = vmatprep.mubr.msk.f32.mxu0 %vm92_vm2, %v4467_v17 }
 0xd34   :  { %v2183_v61 = vpop.f32.mrf.mxu0 }
 0xd35   :  { %4159 = vmatprep.subr.mxu0 %v2183_v61 }
 0xd36   :  { %v4158_v2 = vpop.f32.mrf.mxu0  ;;  %4160 = vmatpush3.msra.mxu0 %v2183_v61 }
 0xd37   :  { %4162 = vmatmul.mubr.msk.f32.vlgmr.msra.gmra.mxu0 %vm92_vm2, %v4472_v28  ;;  %4171 = vmatprep.subr.mxu0 %v4369_v0 }
 0xd38   :  { %4172 = vmatpush3.msra.mxu0 %v2383_v62  ;;  %4179 = vmatprep.mubr.msk.f32.mxu0 %vm4370_vm0, %v4369_v0 }
 0xd39   :  { %4173 = vmatprep.subr.mxu0 %v4369_v0 }
 0xd3a   :  { %4174 = vmatpush3.msra.mxu0 %v2382_v6 }
 0xd3b   :  { %4175 = vmatprep.subr.mxu0 %v4369_v0 }
 0xd3c   :  { %4176 = vmatpush3.msra.mxu0 %v2381_v7 }
 0xd3d   :  { %4177 = vmatprep.subr.mxu0 %v4369_v0 }
 0xd3e   :  { %4178 = vmatpush3.msra.mxu0 %v2380_v13 }
 0xd3f   :  { %4180 = vmatmul.mubr.msk.f32.vlgmr.msra.gmra.mxu0 %vm513_vm12, %v865_v60  ;;  %4193 = vmatprep.subr.msk.mxu0 %vm258_vm4, %v2538_v16 }
 0xd40   :  { %4194 = vmatpush3.msk.msra.mxu0 %vm258_vm4, %v2538_v16  ;;  %4195 = vmatprep.mubr.msk.f32.mxu0 %vm251_vm5, %v4444_v9 }
 0xd43   :  { %4196 = vmatmul.mubr.msk.f32.vlgmr.msra.gmra.mxu0 %vm251_vm5, %v4449_v10 }
 0xd44   :  { %4205 = vmatprep.mubr.msk.f32.mxu0 %vm92_vm2, %v4462_v15 }
 0xdf7   :  { %v4163_v18 = vpop.f32.mrf.mxu0 }
 0xdf8   :  { %v2263_v19 = vmax.f32 %v4163_v18, 1e-20 }
 0xdf9   :  { %v2253_v20 = vpop.f32.mrf.mxu0 }
 0xdfa   :  { %4322 = vrcp.f32 %v2263_v19  ;;  %v2262_v58 = vmax.f32 %v2253_v20, 1e-20 }
 0xdfc   :  { %4324 = vrcp.f32 %v2262_v58 }
 0xdff   :  { %v2455_v60 = vpop.f32.mrf.mxu0 }
 0xe00   :  { %v2456_v39 = vadd.f32 %v3811_v43, %v2455_v60 }
 0xe01   :  { %v4181_v21 = vpop.f32.mrf.mxu0 }
 0xe03   :  { %v4197_v51 = vpop.f32.mrf.mxu0 }
 0xe05   :  { %v2608_v54 = vpop.f32.mrf.mxu0 }
 0xe07   :  { %v4323_v22 = vpop.eup %4322 }
 0xe08   :  { %v2267_v23 = vmul.f32 %v4323_v22, %v4319_v59 }
 0xe09   :  { %v4325_v24 = vpop.eup %4324 }
 0xe0a   :  { %2285 = vperm.xlu1 %4294, %v2267_v23   ;;  %v2265_v5 = vmul.f32 %v4325_v24, %v4321_v36 }
 0xe0c   :  { %2281 = vperm.xlu0 %4290, %v2265_v5  }
 0xe0e   :  { %4295 = vset.pattern.permute.xlu1 %v4371_v1 }
 0xe0f   :  { %2275 = vperm.xlu1 %4295, %v2267_v23  }
 0xe10   :  { %4296 = vset.pattern.permute.xlu0 %v4371_v1 }
 0xe11   :  { %2270 = vperm.xlu0 %4296, %v2265_v5  }
 0xe13   :  { %4298 = vset.pattern.permute.xlu1 %v4372_v11 }
 0xe15   :  { %4297 = vset.pattern.permute.xlu0 %v4372_v11 }
 0xe85   :  { %v2286_v9 = vpop.permute.xlu1 %2285 }
 0xe86   :  { %v2289_v10 = vmul.f32 %v4636_v34, %v2286_v9 }
 0xe87   :  { %v2282_v25 = vpop.permute.xlu0 %2281 }
 0xe88   :  { %2296 = vrot.lane.b32.xlu1 %v2289_v10, %s4373_s4  ;;  %v2288_v26 = vmul.f32 %v2282_v25, %v4639_v63 }
 0xe8a   :  { %v2276_v27 = vpop.permute.xlu1 %2275 }
 0xe8b   :  { %v2279_v30 = vmul.f32 %v4636_v34, %v2276_v27  ;;  %v2461_v34 = vld [vmem:[#allocation2 + $0x158] sm:$0xff] }
 0xe8c   :  { %2294 = vrot.lane.b32.xlu1 %v2288_v26, %s4373_s4  ;;  %v2271_v31 = vpop.permute.xlu0 %2270 }
 0xe8d   :  { %v2278_v3 = vmul.f32 %v2271_v31, %v4639_v63  ;;  %v2460_v63 = vld [vmem:[#allocation2 + $0x150] sm:$0xff] }
 0xefa   :  { %v2297_v32 = vpop.permute.xlu1 %2296 }
 0xefb   :  { %v2301_v35 = vadd.f32 %v2297_v32, %v2279_v30 }
 0xefd   :  { %v2303_v37 = vmul.f32 0.5, %v2301_v35 }
 0xefe   :  { %v2295_v38 = vpop.permute.xlu1 %2294 }
 0xeff   :  { %v2300_v40 = vadd.f32 %v2295_v38, %v2278_v3  ;;  %4165 = vmatpush3.msra.mxu1 %v2303_v37 }
 0xf00   :  { %4166 = vmatprep.subr.mxu1 %v4369_v0 }
 0xf01   :  { %v2302_v41 = vmul.f32 0.5, %v2300_v40 }
 0xf03   :  { %4167 = vmatpush3.msra.mxu1 %v2302_v41 }
 0xf04   :  { %4169 = vmatmul.mubr.msk.f32.vlgmr.msra.gmra.mxu1 %vm611_vm15, %v4509_v8  ;;  %4182 = vmatprep.subr.mxu1 %v4369_v0 }
 0xf05   :  { %4183 = vmatpush3.msra.mxu1 %v2462_v42  ;;  %4190 = vmatprep.mubr.msk.f32.mxu1 %vm4370_vm0, %v4369_v0 }
 0xf06   :  { %4184 = vmatprep.subr.mxu1 %v4369_v0 }
 0xf07   :  { %4185 = vmatpush3.msra.mxu1 %v2461_v34 }
 0xf08   :  { %4186 = vmatprep.subr.mxu1 %v4369_v0 }
 0xf09   :  { %4187 = vmatpush3.msra.mxu1 %v2460_v63 }
 0xf0a   :  { %4188 = vmatprep.subr.mxu1 %v4369_v0 }
 0xf0b   :  { %4189 = vmatpush3.msra.mxu1 %v2459_v44 }
 0xf0c   :  { %4191 = vmatmul.mubr.msk.f32.vlgmr.msra.gmra.mxu1 %vm513_vm12, %v1613_v14  ;;  %4198 = vmatprep.subr.mxu1 %v2456_v39  ;;  %v2779_v14 = vld [vmem:[#allocation2 + $0x188] sm:$0xff] }
 0xf0d   :  { %4199 = vmatpush3.msra.mxu1 %v2456_v39  ;;  %4200 = vmatprep.mubr.msk.f32.mxu1 %vm92_vm2, %v4467_v17 }
 0xf0e   :  { %4208 = vmatprep.subr.mxu1 %v2780_v12 }
 0xf10   :  { %4201 = vmatmul.mubr.msk.f32.vlgmr.msra.gmra.mxu1 %vm92_vm2, %v4472_v28 }
 0xf11   :  { %4209 = vmatpush3.msra.mxu1 %v2780_v12 }
 0xf12   :  { %4210 = vmatprep.subr.mxu1 %v2779_v14 }
 0xf13   :  { %4211 = vmatpush3.msra.mxu1 %v2779_v14 }
 0xf14   :  { %4212 = vmatprep.subr.mxu1 %v2778_v49 }
 0xf15   :  { %4213 = vmatpush3.msra.mxu1 %v2778_v49  ;;  %v3141_v49 = vld [vmem:[#allocation2 + $0x1a8] sm:$0xff] }
 0xf16   :  { %4214 = vmatprep.subr.mxu1 %v2777_v50 }
 0xf17   :  { %4215 = vmatpush3.msra.mxu1 %v2777_v50  ;;  %v3140_v50 = vld [vmem:[#allocation2 + $0x1a0] sm:$0xff] }
 0xf18   :  { %4231 = vmatprep.subr.mxu1 %v4369_v0 }
 0xfc4   :  { %v4698_v8 = vpop.f32.mrf.mxu1 }
 0xfc6   :  { %v4170_v45 = vpop.f32.mrf.mxu1 }
 0xfcc   :  { %v2534_v47 = vpop.f32.mrf.mxu1 }
 0xfcd   :  { %v2535_v48 = vadd.f32 %v3813_v46, %v2534_v47 }
 0xfce   :  { %v4192_v4 = vpop.f32.mrf.mxu1 }
 0xfcf   :  { %4203 = vmatprep.subr.mxu0 %v2535_v48 }
 0xfd0   :  { %4204 = vmatpush3.msra.mxu0 %v2535_v48  ;;  %v4706_v52 = vpop.f32.mrf.mxu1 }
 0xfd1   :  { %4206 = vmatmul.mubr.msk.f32.vlgmr.msra.gmra.mxu0 %vm92_vm2, %v4475_v29  ;;  %4219 = vmatprep.subr.mxu0 %v4369_v0 }
 0xfd2   :  { %4223 = vmatprep.mubr.msk.f32.mxu0 %vm4370_vm0, %v4369_v0  ;;  %v4709_v53 = vpop.f32.mrf.mxu1 }
0x1091   :  { %v4207_v55 = vpop.f32.mrf.mxu0 }
0x1092   :  { %v2768_v56 = vadd.f32 %v4207_v55, %v4706_v52 }
0x1093   :  { %v2758_v57 = vpop.f32.mrf.mxu0 }
0x1094   :  { %v2770_v59 = vadd.f32 %v4197_v51, %v2768_v56  ;;  %v2767_v36 = vadd.f32 %v2758_v57, %v4709_v53  ;;  %v3827_v51 = vld [vmem:[#allocation2 + $0x198] ss:$0 sm:$0xff] }
0x1096   :  { %v2769_v61 = vadd.f32 %v2767_v36, %v2608_v54  ;;  %v2774_v62 = vmul.f32 0.2, %v2770_v59  ;;  %vm2772_vm9 = vcmp.gt.f32.partialorder %v2770_v59, 0.0  ;;  %v4342_v36 = vld [vmem:[%s4780_s2] sm:$0xff] }
0x1098   :  { %v2773_v2 = vmul.f32 0.2, %v2769_v61  ;;  %vm2771_vm10 = vcmp.gt.f32.partialorder %v2769_v61, 0.0  ;;  %v2776_v7 = vsel %vm2772_vm9, %v2770_v59, %v2774_v62 }
0x109a   :  { %v2775_v6 = vsel %vm2771_vm10, %v2769_v61, %v2773_v2  ;;  %v4343_v61 = vld [vmem:[%s4780_s2 + $0x8] sm:$0xff] }
0x109b   :  { %4216 = vmatprep.mubr.msk.f32.mxu1 %vm513_vm12, %v2775_v6 }
0x109c   :  { %4217 = vmatmul.mubr.msk.f32.vlgmr.msra.gmra.mxu1 %vm513_vm12, %v2776_v7  ;;  %v3833_v7 = vld [vmem:[#allocation2 + $0x1c8] ss:$0 sm:$0xff] }
0x109d   :  { %4235 = vmatprep.mubr.msk.f32.mxu1 %vm4370_vm0, %v4369_v0 }
0x115c   :  { %v4218_v13 = vpop.f32.mrf.mxu1 }
0x115d   :  { %v2863_v18 = vsel %vm595_vm13, %v4218_v13, -inf }
0x115e   :  { %v2853_v16 = vpop.f32.mrf.mxu1 }
0x115f   :  { %v2862_v19 = vsel %vm595_vm13, %v2853_v16, -inf }
0x1160   :  { %v2864_v20 = vmax.f32 %v2862_v19, %v2863_v18 }
0x1162   :  { %v2865_v58 = vrot.slane %v2864_v20, 4 }
0x1164   :  { %v2866_v60 = vmax.f32 %v2864_v20, %v2865_v58 }
0x1166   :  { %v2867_v21 = vrot.slane %v2866_v60, 2 }
0x1168   :  { %v2868_v22 = vmax.f32 %v2866_v60, %v2867_v21 }
0x116a   :  { %v2869_v23 = vrot.slane %v2868_v22, 1 }
0x116c   :  { %v2870_v24 = vmax.f32 %v2868_v22, %v2869_v23 }
0x116e   :  { %v2871_v5 = vsub.f32 %v2853_v16, %v2870_v24  ;;  %v2872_v9 = vsub.f32 %v4218_v13, %v2870_v24  ;;  %v3565_v24 = vld [vmem:[#allocation2 + $0x1e8] sm:$0xff] }
0x1170   :  { %v2875_v10 = vmul.f32 1.442695, %v2872_v9  ;;  %v2873_v25 = vmul.f32 1.442695, %v2871_v5 }
0x1172   :  { %4326 = vpow2.f32 %v2875_v10 }
0x1173   :  { %4328 = vpow2.f32 %v2873_v25 }
0x117f   :  { %v4327_v26 = vpop.eup %4326 }
0x1180   :  { %4220 = vmatpush3.msra.mxu0 %v4327_v26  ;;  %v4329_v27 = vpop.eup %4328 }
0x1181   :  { %4221 = vmatprep.subr.mxu0 %v4369_v0 }
0x1182   :  { %4222 = vmatpush3.msra.mxu0 %v4329_v27 }
0x1183   :  { %4224 = vmatmul.mubr.msk.f32.vlgmr.msra.gmra.mxu0 %vm611_vm15, %v4574_v33 }
0x1184   :  { %4228 = vmatprep.mubr.msk.f32.mxu0 %vm92_vm2, %v4462_v15 }
0x1243   :  { %v2943_v30 = vpop.f32.mrf.mxu0 }
0x1244   :  { %4226 = vmatprep.subr.mxu0 %v2943_v30 }
0x1245   :  { %v4225_v31 = vpop.f32.mrf.mxu0  ;;  %4227 = vmatpush3.msra.mxu0 %v2943_v30 }
0x1246   :  { %4229 = vmatmul.mubr.msk.f32.vlgmr.msra.gmra.mxu0 %vm92_vm2, %v4475_v29  ;;  %4238 = vmatprep.subr.mxu0 %v4369_v0 }
0x1247   :  { %4242 = vmatprep.mubr.msk.f32.mxu0 %vm4370_vm0, %v4369_v0  ;;  %4239 = vmatpush3.msra.mxu0 %v3141_v49 }
0x1248   :  { %4240 = vmatprep.subr.mxu0 %v4369_v0 }
0x1249   :  { %4241 = vmatpush3.msra.mxu0 %v3140_v50 }
0x124a   :  { %4250 = vmatprep.subr.mxu0 %v4369_v0 }
0x1306   :  { %v4230_v32 = vpop.f32.mrf.mxu0 }
0x1307   :  { %v3023_v35 = vmax.f32 %v4230_v32, 1e-20 }
0x1308   :  { %v3013_v3 = vpop.f32.mrf.mxu0 }
0x1309   :  { %4330 = vrcp.f32 %v3023_v35  ;;  %v3022_v37 = vmax.f32 %v3013_v3, 1e-20 }
0x130b   :  { %4332 = vrcp.f32 %v3022_v37 }
0x1316   :  { %v4331_v38 = vpop.eup %4330 }
0x1317   :  { %v3027_v40 = vmul.f32 %v4331_v38, %v4327_v26 }
0x1318   :  { %v4333_v41 = vpop.eup %4332 }
0x1319   :  { %3045 = vperm.xlu0 %4297, %v3027_v40   ;;  %v3025_v42 = vmul.f32 %v4333_v41, %v4329_v27 }
0x131b   :  { %3041 = vperm.xlu1 %4298, %v3025_v42  }
0x131d   :  { %4300 = vset.pattern.permute.xlu0 %v4371_v1 }
0x131e   :  { %3030 = vperm.xlu0 %4300, %v3025_v42  }
0x131f   :  { %4299 = vset.pattern.permute.xlu1 %v4371_v1 }
0x1320   :  { %3035 = vperm.xlu1 %4299, %v3027_v40   ;;  %v3837_v40 = vld [vmem:[#allocation2 + $0x1d8] ss:$0 sm:$0xff] }
0x1322   :  { %4301 = vset.pattern.permute.xlu0 %v4372_v11 }
0x1394   :  { %v3046_v34 = vpop.permute.xlu0 %3045 }
0x1395   :  { %v3049_v63 = vmul.f32 %v4706_v52, %v3046_v34 }
0x1396   :  { %v3042_v43 = vpop.permute.xlu1 %3041 }
0x1397   :  { %3056 = vrot.lane.b32.xlu1 %v3049_v63, %s4373_s4  ;;  %v3048_v44 = vmul.f32 %v3042_v43, %v4709_v53 }
0x1399   :  { %v3031_v46 = vpop.permute.xlu0 %3030 }
0x139a   :  { %v3038_v1 = vmul.f32 %v3031_v46, %v4709_v53 }
0x139b   :  { %3054 = vrot.lane.b32.xlu1 %v3048_v44, %s4373_s4  ;;  %v3036_v39 = vpop.permute.xlu1 %3035 }
0x139c   :  { %v3039_v45 = vmul.f32 %v4706_v52, %v3036_v39  ;;  %v3809_v52 = vld [vmem:[#allocation2 + $0x118] ss:$0 sm:$0xff] }
0x139d   :  { %v2376_v53 = vadd.f32 %v3809_v52, %v4698_v8  ;;  %v3450_v8 = vld [vmem:[#allocation2 + $0x1d0] sm:$0xf] }
0x139f   :  { %v2379_v59 = vmax.f32 %v2376_v53, 0.0 }
0x1409   :  { %v3057_v47 = vpop.permute.xlu1 %3056 }
0x140a   :  { %v3061_v48 = vadd.f32 %v3057_v47, %v3039_v45 }
0x140c   :  { %v3063_v4 = vmul.f32 0.5, %v3061_v48 }
0x140d   :  { %v3055_v11 = vpop.permute.xlu1 %3054 }
0x140e   :  { %v3060_v12 = vadd.f32 %v3055_v11, %v3038_v1  ;;  %4232 = vmatpush3.msra.mxu1 %v3063_v4  ;;  %v3655_v4 = vld [vmem:[#allocation2 + $0x200] sm:$0xff]  ;;  %v3654_v11 = vld [vmem:[#allocation2 + $0x1f8] sm:$0xff] }
0x140f   :  { %4233 = vmatprep.subr.mxu1 %v4369_v0 }
0x1410   :  { %v3062_v14 = vmul.f32 0.5, %v3060_v12  ;;  %v3841_v12 = vld [vmem:[#allocation2 + $0x1f0] ss:$0 sm:$0xff] }
0x1412   :  { %4234 = vmatpush3.msra.mxu1 %v3062_v14 }
0x1413   :  { %4236 = vmatmul.mubr.msk.f32.vlgmr.msra.gmra.mxu1 %vm611_vm15, %v4574_v33  ;;  %v3296_v33 = vld [vmem:[#allocation2 + $0x1c0] sm:$0xff] }
0x1414   :  { %4247 = vmatprep.mubr.msk.f32.mxu1 %vm92_vm2, %v4462_v15  ;;  %v3295_v15 = vld [vmem:[#allocation2 + $0x1b8] sm:$0xff] }
0x14d3   :  { %v3135_v54 = vpop.f32.mrf.mxu1 }
0x14d4   :  { %v3136_v55 = vadd.f32 %v3827_v51, %v3135_v54 }
0x14d5   :  { %v4237_v56 = vpop.f32.mrf.mxu1 }
0x14d6   :  { %v3139_v57 = vmax.f32 %v3136_v55, 0.0  ;;  %v3844_v55 = vld [vmem:[#allocation2 + $0x208] ss:$0 sm:$0xff] }
0x14d8   :  { %4243 = vmatmul.mubr.msk.f32.vlgmr.msra.gmra.mxu0 %vm611_vm15, %v3139_v57 }
0x14d9   :  { %4251 = vmatpush3.msra.mxu0 %v3296_v33  ;;  %4254 = vmatprep.mubr.msk.f32.mxu0 %vm4370_vm0, %v4369_v0 }
0x14da   :  { %4252 = vmatprep.subr.mxu0 %v4369_v0  ;;  %v3829_v0 = vld [vmem:[#allocation2 + $0x1b0] ss:$0 sm:$0xff] }
0x14db   :  { %4253 = vmatpush3.msra.mxu0 %v3295_v15 }
0x14dc   :  { %4255 = vmatmul.mubr.msk.f32.vlgmr.msra.gmra.mxu0 %vm611_vm15, %v2379_v59  ;;  %4262 = vmatprep.subr.msk.mxu0 %vm258_vm4, %v3450_v8 }
0x14dd   :  { %4264 = vmatprep.mubr.msk.f32.mxu0 %vm251_vm5, %v4342_v36  ;;  %4263 = vmatpush3.msk.msra.mxu0 %vm258_vm4, %v3450_v8 }
0x14de   :  { %4274 = vmatprep.subr.mxu0 %v3655_v4 }
0x14e0   :  { %4265 = vmatmul.mubr.msk.f32.vlgmr.msra.gmra.mxu0 %vm251_vm5, %v4343_v61 }
0x14e1   :  { %4275 = vmatpush3.msra.mxu0 %v3655_v4 }
0x14e2   :  { %4276 = vmatprep.subr.mxu0 %v3654_v11 }
0x14e3   :  { %4277 = vmatpush3.msra.mxu0 %v3654_v11 }
0x1598   :  { %v3216_v62 = vpop.f32.mrf.mxu0 }
0x1599   :  { %v3217_v2 = vadd.f32 %v3829_v0, %v3216_v62 }
0x159a   :  { %v4244_v6 = vpop.f32.mrf.mxu0 }
0x159b   :  { %4245 = vmatprep.subr.mxu1 %v3217_v2 }
0x159c   :  { %4246 = vmatpush3.msra.mxu1 %v3217_v2  ;;  %v3371_v13 = vpop.f32.mrf.mxu0 }
0x159d   :  { %v3372_v16 = vadd.f32 %v3833_v7, %v3371_v13  ;;  %4248 = vmatmul.mubr.msk.f32.vlgmr.msra.gmra.mxu1 %vm92_vm2, %v4475_v29 }
0x159e   :  { %v4256_v18 = vpop.f32.mrf.mxu0  ;;  %4259 = vmatprep.mubr.msk.f32.mxu1 %vm92_vm2, %v4467_v17  ;;  %v3564_v17 = vld [vmem:[#allocation2 + $0x1e0] sm:$0xff] }
0x159f   :  { %4257 = vmatprep.subr.mxu1 %v3372_v16 }
0x15a0   :  { %4258 = vmatpush3.msra.mxu1 %v3372_v16  ;;  %v4266_v3 = vpop.f32.mrf.mxu0 }
0x15a1   :  { %4260 = vmatmul.mubr.msk.f32.vlgmr.msra.gmra.mxu1 %vm92_vm2, %v4472_v28  ;;  %4267 = vmatprep.subr.mxu1 %v3565_v24  ;;  %v3531_v39 = vadd.f32 %v4266_v3, %v3837_v40 }
0x15a2   :  { %4268 = vmatpush3.msra.mxu1 %v3565_v24  ;;  %v3525_v63 = vpop.f32.mrf.mxu0 }
0x15a3   :  { %4269 = vmatprep.subr.mxu1 %v3564_v17  ;;  %v3526_v46 = vadd.f32 %v3837_v40, %v3525_v63 }
0x15a4   :  { %4270 = vmatpush3.msra.mxu1 %v3564_v17 }
0x165d   :  { %v4249_v19 = vpop.f32.mrf.mxu1 }
0x165f   :  { %v3286_v20 = vpop.f32.mrf.mxu1 }
0x1661   :  { %v4261_v58 = vpop.f32.mrf.mxu1 }
0x1662   :  { %v3535_v60 = vmul.f32 %v4261_v58, %v4249_v19 }
0x1663   :  { %v3441_v21 = vpop.f32.mrf.mxu1 }
0x1664   :  { %v3534_v22 = vmul.f32 %v3441_v21, %v3286_v20  ;;  %v3539_v23 = vsel %vm611_vm15, %v3535_v60, 0.0 }
0x1665   :  { %3540 = vadd.xlane.f32.xlu1 %v3539_v23 }
0x1666   :  { %v3536_v29 = vsel %vm611_vm15, %v3534_v22, 0.0 }
0x1667   :  { %3537 = vadd.xlane.f32.xlu0 %v3536_v29 }
0x16ee   :  { %v3541_v5 = vpop.xlane.xlu1 %3540 }
0x16ef   :  { %v3543_v28 = vsub.f32 0.0, %v3541_v5 }
0x16f0   :  { %v3538_v9 = vpop.xlane.xlu0 %3537 }
0x16f1   :  { %v3546_v10 = vmul.f32 1.442695, %v3543_v28  ;;  %v3542_v25 = vsub.f32 0.0, %v3538_v9 }
0x16f3   :  { %4334 = vpow2.f32 %v3546_v10  ;;  %v3544_v26 = vmul.f32 1.442695, %v3542_v25 }
0x16f5   :  { %4336 = vpow2.f32 %v3544_v26 }
0x1700   :  { %v4335_v27 = vpop.eup %4334 }
0x1701   :  { %v3549_v30 = vadd.f32 1.0, %v4335_v27 }
0x1702   :  { %v4337_v31 = vpop.eup %4336 }
0x1703   :  { %4338 = vrcp.f32 %v3549_v30  ;;  %v3548_v32 = vadd.f32 1.0, %v4337_v31 }
0x1705   :  { %4340 = vrcp.f32 %v3548_v32 }
0x1710   :  { %v4339_v35 = vpop.eup %4338 }
0x1711   :  { %v3557_v37 = vsub.f32 1.0, %v4339_v35  ;;  %v3555_v34 = vmul.f32 %v4339_v35, %v4261_v58 }
0x1712   :  { %v4341_v38 = vpop.eup %4340 }
0x1713   :  { %v3559_v41 = vmul.f32 %v4249_v19, %v3557_v37  ;;  %v3556_v42 = vsub.f32 1.0, %v4341_v38  ;;  %v3554_v43 = vmul.f32 %v4341_v38, %v3441_v21 }
0x1715   :  { %v3558_v44 = vmul.f32 %v3556_v42, %v3286_v20  ;;  %v3561_v45 = vadd.f32 %v3559_v41, %v3555_v34 }
0x1717   :  { %v3560_v47 = vadd.f32 %v3558_v44, %v3554_v43  ;;  %v3563_v1 = vadd.f32 %v3561_v45, %v3531_v39 }
0x1719   :  { %v3562_v48 = vadd.f32 %v3560_v47, %v3526_v46 }
0x171b   :  { %4271 = vmatprep.mubr.msk.f32.mxu1 %vm611_vm15, %v3562_v48 }
0x171c   :  { %4272 = vmatmul.mubr.msk.f32.vlgmr.msra.gmra.mxu1 %vm611_vm15, %v3563_v1 }
0x17dc   :  { %v4273_v14 = vpop.f32.mrf.mxu1 }
0x17dd   :  { %v3649_v49 = vadd.f32 %v4273_v14, %v3841_v12 }
0x17de   :  { %v3643_v50 = vpop.f32.mrf.mxu1 }
0x17df   :  { %v3644_v51 = vadd.f32 %v3841_v12, %v3643_v50  ;;  %v3653_v54 = vmax.f32 %v3649_v49, 0.0 }
0x17e1   :  { %v3652_v52 = vmax.f32 %v3644_v51, 0.0 }
0x17e3   :  { %4278 = vmatprep.mubr.msk.f32.mxu0 %vm611_vm15, %v3652_v52 }
0x17e4   :  { %4279 = vmatmul.mubr.msk.f32.vlgmr.msra.gmra.mxu0 %vm611_vm15, %v3653_v54 }
0x18a4   :  { %v4280_v56 = vpop.f32.mrf.mxu0 }
0x18a5   :  { %v3739_v53 = vadd.f32 %v4280_v56, %v3844_v55 }
0x18a6   :  { %v3733_v57 = vpop.f32.mrf.mxu0 }
0x18a7   :  { %3743 = vst [vmem:[%s4784_s6 + $0x8] sm:$0xff] %v3739_v53  ;;  %v3734_v33 = vadd.f32 %v3844_v55, %v3733_v57 }
0x18a9   :  { %3742 = vst [vmem:[%s4784_s6] sm:$0xff] %v3734_v33 }
0x18aa   :  { %3748 = vsyncpa [#allocation3], 1 }

</bundles_post_ra>
